<compile_context>
chip_gen: v6e
topology: v6e:2x2x1
jax: 0.10.0
libtpu: 0.0.40
codegen_flags: <defaults>
</compile_context>

<pallas_src>
import functools

import jax
import jax.numpy as jnp
from jax import lax
from jax.experimental import pallas as pl
from jax.experimental.pallas import tpu as pltpu

_VMEM_LIMIT_BYTES = 32 * 1024 * 1024   # tiles use ~3 MiB; safe on v5e/v6e/v7x


def _round_up(x, m):
    return -(-x // m) * m


def _pick_tile(dim, cap=512):
    # Multiples of 128 satisfy the (8, 128) block constraints for f32 and bf16.
    return min(cap, _round_up(dim, 128))


# ---------------------------------------------------------------------------
# Pallas kernels
# ---------------------------------------------------------------------------
def _project_kernel(x_ref, w_ref, out_ref):
    """out = x @ w for one row tile (small contraction dim kept whole)."""
    out_ref[...] = jnp.dot(
        x_ref[...], w_ref[...], preferred_element_type=jnp.float32
    ).astype(out_ref.dtype)


def _aggregate_kernel(h_ref, f_ref, dinv_ref, b_ref, a_ref,
                      out_ref, acc_ref, *, transpose_h):
    """out = PReLU(d_inv * (H(^T) @ f) + b), accumulated over grid axis 1."""
    k = pl.program_id(1)

    @pl.when(k == 0)
    def _():
        acc_ref[...] = jnp.zeros_like(acc_ref)

    h = h_ref[...]                                  # bf16 incidence tile
    f = f_ref[...]                                  # bf16 feature tile
    if transpose_h:
        # Contract over H's node axis (axis 0): (tk, trows)^T @ (tk, dout).
        acc_ref[...] += lax.dot_general(
            h, f, dimension_numbers=(((0,), (0,)), ((), ())),
            preferred_element_type=jnp.float32)
    else:
        acc_ref[...] += jnp.dot(h, f, preferred_element_type=jnp.float32)

    @pl.when(k == pl.num_programs(1) - 1)
    def _():
        a = a_ref[0]                                    # PReLU slope (SMEM scalar)
        y = dinv_ref[...] * acc_ref[...] + b_ref[...]   # f32 epilogue
        out_ref[...] = jnp.where(y >= 0.0, y, a * y)


# ---------------------------------------------------------------------------
# pallas_call wrappers
# ---------------------------------------------------------------------------
def _project(x, w, tile_rows):
    rows, din = x.shape
    dout = w.shape[1]
    return pl.pallas_call(
        _project_kernel,
        out_shape=jax.ShapeDtypeStruct((rows, dout), jnp.bfloat16),
        grid=(rows // tile_rows,),
        in_specs=[pl.BlockSpec((tile_rows, din), lambda i: (i, 0)),
                  pl.BlockSpec((din, dout), lambda i: (0, 0))],
        out_specs=pl.BlockSpec((tile_rows, dout), lambda i: (i, 0)),
        compiler_params=pltpu.CompilerParams(
            dimension_semantics=("parallel",),
            vmem_limit_bytes=_VMEM_LIMIT_BYTES),
    )(x, w)


def _aggregate(H, feats, d_inv, bias, prelu_a, *, tile_rows, tile_k, transpose_h):
    n_pad, e_pad = H.shape
    dout = feats.shape[1]
    if transpose_h:
        # Output rows = hyperedges, contraction over node tiles.
        grid = (e_pad // tile_rows, n_pad // tile_k)
        h_spec = pl.BlockSpec((tile_k, tile_rows), lambda j, k: (k, j))
        out_rows = e_pad
    else:
        # Output rows = nodes, contraction over hyperedge tiles.
        grid = (n_pad // tile_rows, e_pad // tile_k)
        h_spec = pl.BlockSpec((tile_rows, tile_k), lambda j, k: (j, k))
        out_rows = n_pad

    kernel = functools.partial(_aggregate_kernel, transpose_h=transpose_h)
    return pl.pallas_call(
        kernel,
        out_shape=jax.ShapeDtypeStruct((out_rows, dout), jnp.float32),
        grid=grid,
        in_specs=[
            h_spec,
            pl.BlockSpec((tile_k, dout), lambda j, k: (k, 0)),
            pl.BlockSpec((tile_rows, 1), lambda j, k: (j, 0)),
            pl.BlockSpec((1, dout), lambda j, k: (0, 0)),
            pl.BlockSpec(memory_space=pltpu.MemorySpace.SMEM),
        ],
        out_specs=pl.BlockSpec((tile_rows, dout), lambda j, k: (j, 0)),
        scratch_shapes=[pltpu.VMEM((tile_rows, dout), jnp.float32)],
        compiler_params=pltpu.CompilerParams(
            dimension_semantics=("parallel", "arbitrary"),
            vmem_limit_bytes=_VMEM_LIMIT_BYTES),
    )(H, feats, d_inv, bias, prelu_a)


# ---------------------------------------------------------------------------
# HyperEncoder wrapper (sparse -> dense glue in plain JAX).
# ---------------------------------------------------------------------------
def _glorot(key, shape):
    fan_in, fan_out = shape
    limit = (6.0 / (fan_in + fan_out)) ** 0.5
    return jax.random.uniform(key, shape, jnp.float32, -limit, limit)


def init_hyper_encoder_params(key, in_dim, edge_dim, node_dim, num_layers=2):
    params = []
    dims_in = [in_dim] + [node_dim] * (num_layers - 1)
    for i in range(num_layers):
        key, k1, k2 = jax.random.split(key, 3)
        params.append(dict(
            w_n2e=_glorot(k1, (dims_in[i], edge_dim)),
            b_n2e=jnp.zeros((1, edge_dim), jnp.float32),
            w_e2n=_glorot(k2, (edge_dim, node_dim)),
            b_e2n=jnp.zeros((1, node_dim), jnp.float32),
        ))
    prelu_a = jnp.array([0.25], jnp.float32)   # single shared nn.PReLU() instance
    return params, prelu_a


@functools.partial(jax.jit, static_argnames=("num_nodes", "num_edges"))
def hyper_encoder_forward(params, prelu_a, x, hyperedge_index, num_nodes, num_edges):
    node_idx, edge_idx = hyperedge_index[0], hyperedge_index[1]
    ones = jnp.ones((hyperedge_index.shape[1],), jnp.float32)

    # Degrees computed once in plain JAX (exact integer counts), masked inverse.
    # TODO(synk): the data-dependent scatter itself has no clean Pallas tile map;
    # it stays in XLA, every matmul/normalization/PReLU is inside Pallas.
    Dn = jnp.zeros((num_nodes,), jnp.float32).at[node_idx].add(ones)
    De = jnp.zeros((num_edges,), jnp.float32).at[edge_idx].add(ones)
    Dn_inv = jnp.where(Dn > 0, 1.0 / Dn, 0.0)
    De_inv = jnp.where(De > 0, 1.0 / De, 0.0)

    # Tile sizes / padding (static shapes under jit).
    tile_n = _pick_tile(num_nodes)
    tile_e = _pick_tile(num_edges)
    n_pad = _round_up(num_nodes, tile_n)
    e_pad = _round_up(num_edges, tile_e)

    # Dense incidence matrix built ONCE, reused by all layers, bf16 storage
    # (incidence counts are exact in bf16), no explicit H^T anywhere.
    H = (jnp.zeros((n_pad, e_pad), jnp.float32)
            .at[node_idx, edge_idx].add(1.0)).astype(jnp.bfloat16)

    Dn_inv = jnp.pad(Dn_inv, (0, n_pad - num_nodes))[:, None]
    De_inv = jnp.pad(De_inv, (0, e_pad - num_edges))[:, None]
    x = jnp.pad(x, ((0, n_pad - num_nodes), (0, 0)))

    e = None
    for layer in params:
        # node -> edge
        x1 = _project(x, layer["w_n2e"], tile_n)                 # (n_pad, edge_dim) bf16
        e = _aggregate(H, x1, De_inv, layer["b_n2e"], prelu_a,
                       tile_rows=tile_e, tile_k=tile_n, transpose_h=True)
        # edge -> node (+ encoder-level PReLU)
        x2 = _project(e, layer["w_e2n"], tile_e)                 # (e_pad, node_dim) bf16
        x = _aggregate(H, x2, Dn_inv, layer["b_e2n"], prelu_a,
                       tile_rows=tile_n, tile_k=tile_e, transpose_h=False)
    return x[:num_nodes], e[:num_edges]


# ---------------------------------------------------------------------------
# Pure-JAX reference (mirrors the PyTorch module) for a correctness check.
# ---------------------------------------------------------------------------
def _reference_forward(params, prelu_a, x, hyperedge_index, num_nodes, num_edges):
    a = prelu_a[0]
    prelu = lambda t: jnp.where(t >= 0, t, a * t)
    node_idx, edge_idx = hyperedge_index[0], hyperedge_index[1]
    ones = jnp.ones((hyperedge_index.shape[1],), jnp.float32)
    Dn = jnp.zeros((num_nodes,), jnp.float32).at[node_idx].add(ones)
    De = jnp.zeros((num_edges,), jnp.float32).at[edge_idx].add(ones)
    Dn_inv = jnp.where(Dn > 0, 1.0 / Dn, 0.0)
    De_inv = jnp.where(De > 0, 1.0 / De, 0.0)
    e = None
    for layer in params:
        x1 = x @ layer["w_n2e"]
        msg = De_inv[edge_idx][:, None] * x1[node_idx]
        e = jnp.zeros((num_edges, x1.shape[1]), jnp.float32).at[edge_idx].add(msg)
        e = prelu(e + layer["b_n2e"])
        x2 = e @ layer["w_e2n"]
        msg = Dn_inv[node_idx][:, None] * x2[edge_idx]
        n = jnp.zeros((num_nodes, x2.shape[1]), jnp.float32).at[node_idx].add(msg)
        x = prelu(n + layer["b_e2n"])
    return x, e


if __name__ == "__main__":
    key = jax.random.PRNGKey(0)
    num_nodes, num_edges = 16, 8
    in_dim, edge_dim, node_dim, num_layers = 32, 32, 32, 2
    nnz = 24

    k_x, k_n, k_e, k_p = jax.random.split(key, 4)
    x = jax.random.normal(k_x, (num_nodes, in_dim), jnp.float32)
    node_idx = jax.random.randint(k_n, (nnz,), 0, num_nodes, jnp.int32)
    edge_idx = jax.random.randint(k_e, (nnz,), 0, num_edges, jnp.int32)
    hyperedge_index = jnp.stack([node_idx, edge_idx], axis=0)

    params, prelu_a = init_hyper_encoder_params(k_p, in_dim, edge_dim, node_dim,
                                                num_layers)

    n_out, e_out = hyper_encoder_forward(params, prelu_a, x, hyperedge_index,
                                         num_nodes, num_edges)
    jax.block_until_ready((n_out, e_out))

    n_ref, e_ref = _reference_forward(params, prelu_a, x, hyperedge_index,
                                      num_nodes, num_edges)
    assert n_out.shape == (num_nodes, node_dim) and e_out.shape == (num_edges, edge_dim)
    # bf16 MXU operands (H, x1, x2) -> ~1e-3-level relative error vs f32 reference.
    assert jnp.allclose(n_out, n_ref, atol=2e-2, rtol=2e-2)
    assert jnp.allclose(e_out, e_ref, atol=2e-2, rtol=2e-2)

    print("KERNEL_OK")
</pallas_src>

<mosaic_0001>
module attributes {stable_mosaic.version = 11 : i64} {
  func.func private @main(%arg0: i32) attributes {dimension_semantics = [#tpu.dimension_semantics<core_parallel>], iteration_bounds = array<i64: 2>, tpu.core_type = #tpu.core_type<sc_scalar_subcore>, window_params = []} {
    return
  }
}

module attributes {stable_mosaic.version = 11 : i64} {
  func.func private @main(%arg0: i32) attributes {dimension_semantics = [#tpu.dimension_semantics<core_parallel>], iteration_bounds = array<i64: 2>, tpu.core_type = #tpu.core_type<sc_scalar_subcore>, window_params = []} {
    return
  }
}

module attributes {stable_mosaic.version = 11 : i64} {
  func.func @_project_kernel(%arg0: i32, %arg1: memref<128x32xf32, #tpu.memory_space<vmem>>, %arg2: memref<32x32xf32, #tpu.memory_space<vmem>>, %arg3: memref<128x32xbf16, #tpu.memory_space<vmem>>) attributes {dimension_semantics = [#tpu.dimension_semantics<parallel>], iteration_bounds = array<i64: 1>, scalar_prefetch = 0 : i64, scratch_operands = 0 : i64, tpu.core_type = #tpu.core_type<tc>, window_params = [{transform_indices = @transform_0, window_bounds = array<i64: 128, 32>}, {pipeline_mode = #tpu.pipeline_mode<synchronous>, transform_indices = @transform_1, window_bounds = array<i64: 32, 32>}, {transform_indices = @transform_2, window_bounds = array<i64: 128, 32>}]} {
    %c0 = arith.constant 0 : index
    %c0_0 = arith.constant 0 : index
    %0 = vector.load %arg1[%c0, %c0_0] : memref<128x32xf32, #tpu.memory_space<vmem>>, vector<128x32xf32>
    %c0_1 = arith.constant 0 : index
    %c0_2 = arith.constant 0 : index
    %1 = vector.load %arg2[%c0_1, %c0_2] : memref<32x32xf32, #tpu.memory_space<vmem>>, vector<32x32xf32>
    %cst = arith.constant dense<0.000000e+00> : vector<128x32xf32>
    %2 = tpu.matmul %0, %1, %cst {dimension_numbers = #tpu.dot_dimension_numbers<[1], [0], [0], [1], [0, 0, 1, 1], [], []>} : vector<128x32xf32>, vector<32x32xf32>, vector<128x32xf32> -> vector<128x32xf32>
    %3 = arith.truncf %2 : vector<128x32xf32> to vector<128x32xbf16>
    %c0_3 = arith.constant 0 : index
    %c0_4 = arith.constant 0 : index
    %4 = vector.load %arg3[%c0_3, %c0_4] : memref<128x32xbf16, #tpu.memory_space<vmem>>, vector<128x32xbf16>
    tpu.vector_store %arg3[%c0_3, %c0_4], %3 {strides = array<i32>} : memref<128x32xbf16, #tpu.memory_space<vmem>>, vector<128x32xbf16>,
    return
  }
  func.func @transform_0(%arg0: i32) -> (i32, i32) {
    %c0_i32 = arith.constant 0 : i32
    %c0_i32_0 = arith.constant 0 : i32
    return %arg0, %c0_i32 : i32, i32
  }
  func.func @transform_1(%arg0: i32) -> (i32, i32) {
    %c0_i32 = arith.constant 0 : i32
    %c0_i32_0 = arith.constant 0 : i32
    %c0_i32_1 = arith.constant 0 : i32
    return %c0_i32, %c0_i32_0 : i32, i32
  }
  func.func @transform_2(%arg0: i32) -> (i32, i32) {
    %c0_i32 = arith.constant 0 : i32
    %c0_i32_0 = arith.constant 0 : i32
    return %arg0, %c0_i32 : i32, i32
  }
}

module attributes {stable_mosaic.version = 11 : i64} {
  func.func @_aggregate_kernel(%arg0: i32, %arg1: i32, %arg2: memref<128x128xbf16, #tpu.memory_space<vmem>>, %arg3: memref<128x32xbf16, #tpu.memory_space<vmem>>, %arg4: memref<128x1xf32, #tpu.memory_space<vmem>>, %arg5: memref<1x32xf32, #tpu.memory_space<vmem>>, %arg6: memref<1xf32, #tpu.memory_space<smem>>, %arg7: memref<128x32xf32, #tpu.memory_space<vmem>>, %arg8: memref<128x32xf32, #tpu.memory_space<vmem>>) attributes {dimension_semantics = [#tpu.dimension_semantics<parallel>, #tpu.dimension_semantics<arbitrary>], iteration_bounds = array<i64: 1, 1>, scalar_prefetch = 0 : i64, scratch_operands = 1 : i64, tpu.core_type = #tpu.core_type<tc>, window_params = [{transform_indices = @transform_0, window_bounds = array<i64: 128, 128>}, {transform_indices = @transform_1, window_bounds = array<i64: 128, 32>}, {transform_indices = @transform_2, window_bounds = array<i64: 128, 1>}, {pipeline_mode = #tpu.pipeline_mode<synchronous>, transform_indices = @transform_3, window_bounds = array<i64: 1, 32>}, {transform_indices = @transform_4, window_bounds = array<i64: 1>}, {transform_indices = @transform_5, window_bounds = array<i64: 128, 32>}]} {
    %c0_i32 = arith.constant 0 : i32
    %0 = arith.cmpi eq, %arg1, %c0_i32 : i32
    %1 = arith.extui %0 : i1 to i32
    %c0_i32_0 = arith.constant 0 : i32
    %2 = arith.cmpi ne, %1, %c0_i32_0 : i32
    scf.if %2 {
      %cst_10 = arith.constant 0.000000e+00 : f32
      %12 = vector.broadcast %cst_10 : f32 to vector<128x32xf32>
      %c0_11 = arith.constant 0 : index
      %c0_12 = arith.constant 0 : index
      %13 = vector.load %arg8[%c0_11, %c0_12] : memref<128x32xf32, #tpu.memory_space<vmem>>, vector<128x32xf32>
      tpu.vector_store %arg8[%c0_11, %c0_12], %12 {strides = array<i32>} : memref<128x32xf32, #tpu.memory_space<vmem>>, vector<128x32xf32>,
    } else {
    }
    %c0 = arith.constant 0 : index
    %c0_1 = arith.constant 0 : index
    %3 = vector.load %arg2[%c0, %c0_1] : memref<128x128xbf16, #tpu.memory_space<vmem>>, vector<128x128xbf16>
    %c0_2 = arith.constant 0 : index
    %c0_3 = arith.constant 0 : index
    %4 = vector.load %arg3[%c0_2, %c0_3] : memref<128x32xbf16, #tpu.memory_space<vmem>>, vector<128x32xbf16>
    %c0_4 = arith.constant 0 : index
    %c0_5 = arith.constant 0 : index
    %5 = vector.load %arg8[%c0_4, %c0_5] : memref<128x32xf32, #tpu.memory_space<vmem>>, vector<128x32xf32>
    %cst = arith.constant dense<0.000000e+00> : vector<128x32xf32>
    %6 = tpu.matmul %3, %4, %cst {dimension_numbers = #tpu.dot_dimension_numbers<[1], [0], [0], [1], [0, 0, 1, 1], [], []>} : vector<128x128xbf16>, vector<128x32xbf16>, vector<128x32xf32> -> vector<128x32xf32>
    %7 = arith.addf %5, %6 : vector<128x32xf32>
    %c0_6 = arith.constant 0 : index
    %c0_7 = arith.constant 0 : index
    %8 = vector.load %arg8[%c0_6, %c0_7] : memref<128x32xf32, #tpu.memory_space<vmem>>, vector<128x32xf32>
    tpu.vector_store %arg8[%c0_6, %c0_7], %7 {strides = array<i32>} : memref<128x32xf32, #tpu.memory_space<vmem>>, vector<128x32xf32>,
    %c0_i32_8 = arith.constant 0 : i32
    %9 = arith.cmpi eq, %arg1, %c0_i32_8 : i32
    %10 = arith.extui %9 : i1 to i32
    %c0_i32_9 = arith.constant 0 : i32
    %11 = arith.cmpi ne, %10, %c0_i32_9 : i32
    scf.if %11 {
      %c0_10 = arith.constant 0 : index
      %12 = memref.load %arg6[%c0_10] : memref<1xf32, #tpu.memory_space<smem>>
      %c0_11 = arith.constant 0 : index
      %c0_12 = arith.constant 0 : index
      %13 = vector.load %arg4[%c0_11, %c0_12] : memref<128x1xf32, #tpu.memory_space<vmem>>, vector<128x1xf32>
      %c0_13 = arith.constant 0 : index
      %c0_14 = arith.constant 0 : index
      %14 = vector.load %arg8[%c0_13, %c0_14] : memref<128x32xf32, #tpu.memory_space<vmem>>, vector<128x32xf32>
      %15 = vector.broadcast %13 : vector<128x1xf32> to vector<128x32xf32>
      %16 = arith.mulf %15, %14 : vector<128x32xf32>
      %c0_15 = arith.constant 0 : index
      %c0_16 = arith.constant 0 : index
      %17 = vector.load %arg5[%c0_15, %c0_16] : memref<1x32xf32, #tpu.memory_space<vmem>>, vector<1x32xf32>
      %18 = vector.broadcast %17 : vector<1x32xf32> to vector<128x32xf32>
      %19 = arith.addf %16, %18 : vector<128x32xf32>
      %cst_17 = arith.constant 0.000000e+00 : f32
      %20 = vector.broadcast %cst_17 : f32 to vector<128x32xf32>
      %21 = arith.cmpf oge, %19, %20 : vector<128x32xf32>
      %22 = vector.broadcast %12 : f32 to vector<128x32xf32>
      %23 = arith.mulf %22, %19 : vector<128x32xf32>
      %24 = arith.select %21, %19, %23 : vector<128x32xi1>, vector<128x32xf32>
      %c0_18 = arith.constant 0 : index
      %c0_19 = arith.constant 0 : index
      %25 = vector.load %arg7[%c0_18, %c0_19] : memref<128x32xf32, #tpu.memory_space<vmem>>, vector<128x32xf32>
      tpu.vector_store %arg7[%c0_18, %c0_19], %24 {strides = array<i32>} : memref<128x32xf32, #tpu.memory_space<vmem>>, vector<128x32xf32>,
    } else {
    }
    return
  }
  func.func @transform_0(%arg0: i32, %arg1: i32) -> (i32, i32) {
    %c0_i32 = arith.constant 0 : i32
    return %arg0, %arg1 : i32, i32
  }
  func.func @transform_1(%arg0: i32, %arg1: i32) -> (i32, i32) {
    %c0_i32 = arith.constant 0 : i32
    %c0_i32_0 = arith.constant 0 : i32
    return %arg1, %c0_i32 : i32, i32
  }
  func.func @transform_2(%arg0: i32, %arg1: i32) -> (i32, i32) {
    %c0_i32 = arith.constant 0 : i32
    %c0_i32_0 = arith.constant 0 : i32
    return %arg0, %c0_i32 : i32, i32
  }
  func.func @transform_3(%arg0: i32, %arg1: i32) -> (i32, i32) {
    %c0_i32 = arith.constant 0 : i32
    %c0_i32_0 = arith.constant 0 : i32
    %c0_i32_1 = arith.constant 0 : i32
    return %c0_i32, %c0_i32_0 : i32, i32
  }
  func.func @transform_4(%arg0: i32, %arg1: i32) -> i32 {
    %c0_i32 = arith.constant 0 : i32
    %c0_i32_0 = arith.constant 0 : i32
    return %c0_i32 : i32
  }
  func.func @transform_5(%arg0: i32, %arg1: i32) -> (i32, i32) {
    %c0_i32 = arith.constant 0 : i32
    %c0_i32_0 = arith.constant 0 : i32
    return %arg0, %c0_i32 : i32, i32
  }
}

module attributes {stable_mosaic.version = 11 : i64} {
  func.func @_aggregate_kernel(%arg0: i32, %arg1: i32, %arg2: memref<128x128xbf16, #tpu.memory_space<vmem>>, %arg3: memref<128x32xbf16, #tpu.memory_space<vmem>>, %arg4: memref<128x1xf32, #tpu.memory_space<vmem>>, %arg5: memref<1x32xf32, #tpu.memory_space<vmem>>, %arg6: memref<1xf32, #tpu.memory_space<smem>>, %arg7: memref<128x32xf32, #tpu.memory_space<vmem>>, %arg8: memref<128x32xf32, #tpu.memory_space<vmem>>) attributes {dimension_semantics = [#tpu.dimension_semantics<parallel>, #tpu.dimension_semantics<arbitrary>], iteration_bounds = array<i64: 1, 1>, scalar_prefetch = 0 : i64, scratch_operands = 1 : i64, tpu.core_type = #tpu.core_type<tc>, window_params = [{transform_indices = @transform_0, window_bounds = array<i64: 128, 128>}, {transform_indices = @transform_1, window_bounds = array<i64: 128, 32>}, {transform_indices = @transform_2, window_bounds = array<i64: 128, 1>}, {pipeline_mode = #tpu.pipeline_mode<synchronous>, transform_indices = @transform_3, window_bounds = array<i64: 1, 32>}, {transform_indices = @transform_4, window_bounds = array<i64: 1>}, {transform_indices = @transform_5, window_bounds = array<i64: 128, 32>}]} {
    %c0_i32 = arith.constant 0 : i32
    %0 = arith.cmpi eq, %arg1, %c0_i32 : i32
    %1 = arith.extui %0 : i1 to i32
    %c0_i32_0 = arith.constant 0 : i32
    %2 = arith.cmpi ne, %1, %c0_i32_0 : i32
    scf.if %2 {
      %cst_10 = arith.constant 0.000000e+00 : f32
      %12 = vector.broadcast %cst_10 : f32 to vector<128x32xf32>
      %c0_11 = arith.constant 0 : index
      %c0_12 = arith.constant 0 : index
      %13 = vector.load %arg8[%c0_11, %c0_12] : memref<128x32xf32, #tpu.memory_space<vmem>>, vector<128x32xf32>
      tpu.vector_store %arg8[%c0_11, %c0_12], %12 {strides = array<i32>} : memref<128x32xf32, #tpu.memory_space<vmem>>, vector<128x32xf32>,
    } else {
    }
    %c0 = arith.constant 0 : index
    %c0_1 = arith.constant 0 : index
    %3 = vector.load %arg2[%c0, %c0_1] : memref<128x128xbf16, #tpu.memory_space<vmem>>, vector<128x128xbf16>
    %c0_2 = arith.constant 0 : index
    %c0_3 = arith.constant 0 : index
    %4 = vector.load %arg3[%c0_2, %c0_3] : memref<128x32xbf16, #tpu.memory_space<vmem>>, vector<128x32xbf16>
    %c0_4 = arith.constant 0 : index
    %c0_5 = arith.constant 0 : index
    %5 = vector.load %arg8[%c0_4, %c0_5] : memref<128x32xf32, #tpu.memory_space<vmem>>, vector<128x32xf32>
    %cst = arith.constant dense<0.000000e+00> : vector<128x32xf32>
    %6 = tpu.matmul %3, %4, %cst {dimension_numbers = #tpu.dot_dimension_numbers<[0], [0], [1], [1], [0, 1, 1, 1], [], []>} : vector<128x128xbf16>, vector<128x32xbf16>, vector<128x32xf32> -> vector<128x32xf32>
    %7 = arith.addf %5, %6 : vector<128x32xf32>
    %c0_6 = arith.constant 0 : index
    %c0_7 = arith.constant 0 : index
    %8 = vector.load %arg8[%c0_6, %c0_7] : memref<128x32xf32, #tpu.memory_space<vmem>>, vector<128x32xf32>
    tpu.vector_store %arg8[%c0_6, %c0_7], %7 {strides = array<i32>} : memref<128x32xf32, #tpu.memory_space<vmem>>, vector<128x32xf32>,
    %c0_i32_8 = arith.constant 0 : i32
    %9 = arith.cmpi eq, %arg1, %c0_i32_8 : i32
    %10 = arith.extui %9 : i1 to i32
    %c0_i32_9 = arith.constant 0 : i32
    %11 = arith.cmpi ne, %10, %c0_i32_9 : i32
    scf.if %11 {
      %c0_10 = arith.constant 0 : index
      %12 = memref.load %arg6[%c0_10] : memref<1xf32, #tpu.memory_space<smem>>
      %c0_11 = arith.constant 0 : index
      %c0_12 = arith.constant 0 : index
      %13 = vector.load %arg4[%c0_11, %c0_12] : memref<128x1xf32, #tpu.memory_space<vmem>>, vector<128x1xf32>
      %c0_13 = arith.constant 0 : index
      %c0_14 = arith.constant 0 : index
      %14 = vector.load %arg8[%c0_13, %c0_14] : memref<128x32xf32, #tpu.memory_space<vmem>>, vector<128x32xf32>
      %15 = vector.broadcast %13 : vector<128x1xf32> to vector<128x32xf32>
      %16 = arith.mulf %15, %14 : vector<128x32xf32>
      %c0_15 = arith.constant 0 : index
      %c0_16 = arith.constant 0 : index
      %17 = vector.load %arg5[%c0_15, %c0_16] : memref<1x32xf32, #tpu.memory_space<vmem>>, vector<1x32xf32>
      %18 = vector.broadcast %17 : vector<1x32xf32> to vector<128x32xf32>
      %19 = arith.addf %16, %18 : vector<128x32xf32>
      %cst_17 = arith.constant 0.000000e+00 : f32
      %20 = vector.broadcast %cst_17 : f32 to vector<128x32xf32>
      %21 = arith.cmpf oge, %19, %20 : vector<128x32xf32>
      %22 = vector.broadcast %12 : f32 to vector<128x32xf32>
      %23 = arith.mulf %22, %19 : vector<128x32xf32>
      %24 = arith.select %21, %19, %23 : vector<128x32xi1>, vector<128x32xf32>
      %c0_18 = arith.constant 0 : index
      %c0_19 = arith.constant 0 : index
      %25 = vector.load %arg7[%c0_18, %c0_19] : memref<128x32xf32, #tpu.memory_space<vmem>>, vector<128x32xf32>
      tpu.vector_store %arg7[%c0_18, %c0_19], %24 {strides = array<i32>} : memref<128x32xf32, #tpu.memory_space<vmem>>, vector<128x32xf32>,
    } else {
    }
    return
  }
  func.func @transform_0(%arg0: i32, %arg1: i32) -> (i32, i32) {
    %c0_i32 = arith.constant 0 : i32
    return %arg1, %arg0 : i32, i32
  }
  func.func @transform_1(%arg0: i32, %arg1: i32) -> (i32, i32) {
    %c0_i32 = arith.constant 0 : i32
    %c0_i32_0 = arith.constant 0 : i32
    return %arg1, %c0_i32 : i32, i32
  }
  func.func @transform_2(%arg0: i32, %arg1: i32) -> (i32, i32) {
    %c0_i32 = arith.constant 0 : i32
    %c0_i32_0 = arith.constant 0 : i32
    return %arg0, %c0_i32 : i32, i32
  }
  func.func @transform_3(%arg0: i32, %arg1: i32) -> (i32, i32) {
    %c0_i32 = arith.constant 0 : i32
    %c0_i32_0 = arith.constant 0 : i32
    %c0_i32_1 = arith.constant 0 : i32
    return %c0_i32, %c0_i32_0 : i32, i32
  }
  func.func @transform_4(%arg0: i32, %arg1: i32) -> i32 {
    %c0_i32 = arith.constant 0 : i32
    %c0_i32_0 = arith.constant 0 : i32
    return %c0_i32 : i32
  }
  func.func @transform_5(%arg0: i32, %arg1: i32) -> (i32, i32) {
    %c0_i32 = arith.constant 0 : i32
    %c0_i32_0 = arith.constant 0 : i32
    return %arg0, %c0_i32 : i32, i32
  }
}

</mosaic_0001>

<bundles_post_ra>
// kernel: hyper_encoder_forward.8
= control target key start
LH: loop header
LB: loop body
LE: loop exit
PB: predicated region body
PF: predicated region fallthrough
CT: control target
= control target key end

     0   :  { %vm31_vm0 = vcmask 261120   ;;  %vm289_vm1 = vcmask 257024   ;;  %s573_s1 = inlined_call_operand.vmem [shape: f32[32,32], index: 1, kind: input, shape index: {}]   ;;  %s574_s0 = inlined_call_operand.vmem [shape: f32[128,32], index: 0, kind: input, shape index: {}]   ;;  %s575_s2 = inlined_call_operand.vmem [shape: bf16[128,32], index: 2, kind: output, shape index: {}]  }
   0x1   :  { %v30_v0 = vld [vmem:[%s573_s1 + $0x18] sm:$0xff]  ;;  %v29_v1 = vld [vmem:[%s573_s1 + $0x10] sm:$0xff]  ;;  %v28_v2 = vld [vmem:[%s573_s1 + $0x8] sm:$0xff] }
   0x2   :  { %378 = vmatprep.subr.mxu0 %v30_v0  ;;  %410 = vmatprep.subr.mxu1 %v30_v0  ;;  %v27_v3 = vld [vmem:[%s573_s1] sm:$0xff]  ;;  %v12_v6 = vld [vmem:[%s574_s0 + $0x8] sm:$0xff]  ;;  %v13_v8 = vld [vmem:[%s574_s0 + $0x10] sm:$0xff] }
   0x3   :  { %379 = vmatpush3.msra.mxu0 %v30_v0  ;;  %414 = vmatpush3.msra.mxu1 %v30_v0  ;;  %v11_v4 = vld [vmem:[%s574_s0] sm:$0xff]  ;;  %v20_v7 = vld [vmem:[%s574_s0 + $0x48] sm:$0xff]  ;;  %v21_v9 = vld [vmem:[%s574_s0 + $0x50] sm:$0xff] }
   0x4   :  { %380 = vmatprep.subr.mxu0 %v29_v1  ;;  %411 = vmatprep.subr.mxu1 %v29_v1  ;;  %v19_v5 = vld [vmem:[%s574_s0 + $0x40] sm:$0xff]  ;;  %v14_v10 = vld [vmem:[%s574_s0 + $0x18] sm:$0xff]  ;;  %v16_v14 = vld [vmem:[%s574_s0 + $0x28] sm:$0xff] }
   0x5   :  { %381 = vmatpush3.msra.mxu0 %v29_v1  ;;  %415 = vmatpush3.msra.mxu1 %v29_v1  ;;  %v22_v11 = vld [vmem:[%s574_s0 + $0x58] sm:$0xff]  ;;  %v15_v12 = vld [vmem:[%s574_s0 + $0x20] sm:$0xff]  ;;  %v24_v15 = vld [vmem:[%s574_s0 + $0x68] sm:$0xff] }
   0x6   :  { %382 = vmatprep.subr.mxu0 %v28_v2  ;;  %412 = vmatprep.subr.mxu1 %v28_v2  ;;  %v23_v13 = vld [vmem:[%s574_s0 + $0x60] sm:$0xff]  ;;  %v17_v16 = vld [vmem:[%s574_s0 + $0x30] sm:$0xff]  ;;  %v18_v18 = vld [vmem:[%s574_s0 + $0x38] sm:$0xff] }
   0x7   :  { %383 = vmatpush3.msra.mxu0 %v28_v2  ;;  %416 = vmatpush3.msra.mxu1 %v28_v2  ;;  %v25_v17 = vld [vmem:[%s574_s0 + $0x70] sm:$0xff]  ;;  %v26_v19 = vld [vmem:[%s574_s0 + $0x78] sm:$0xff] }
   0x8   :  { %384 = vmatprep.subr.mxu0 %v27_v3  ;;  %413 = vmatprep.subr.mxu1 %v27_v3 }
   0x9   :  { %385 = vmatpush3.msra.mxu0 %v27_v3  ;;  %417 = vmatpush3.msra.mxu1 %v27_v3 }
   0xa   :  { %386 = vmatprep.mubr.msk.f32.mxu0 %vm31_vm0, %v11_v4  ;;  %398 = vmatprep.mubr.msk.f32.mxu1 %vm31_vm0, %v19_v5 }
   0xb   :  { %387 = vmatmul.mubr.msk.f32.vlgmr.msra.gmra.mxu0 %vm31_vm0, %v12_v6  ;;  %399 = vmatmul.mubr.msk.f32.vlgmr.msra.gmra.mxu1 %vm31_vm0, %v20_v7 }
   0xc   :  { %389 = vmatprep.mubr.msk.f32.mxu0 %vm31_vm0, %v13_v8  ;;  %401 = vmatprep.mubr.msk.f32.mxu1 %vm31_vm0, %v21_v9 }
   0xf   :  { %390 = vmatmul.mubr.msk.f32.gmra.mxu0 %vm31_vm0, %v14_v10  ;;  %402 = vmatmul.mubr.msk.f32.gmra.mxu1 %vm31_vm0, %v22_v11 }
  0x10   :  { %392 = vmatprep.mubr.msk.f32.mxu0 %vm31_vm0, %v15_v12  ;;  %404 = vmatprep.mubr.msk.f32.mxu1 %vm31_vm0, %v23_v13 }
  0x13   :  { %393 = vmatmul.mubr.msk.f32.gmra.mxu0 %vm31_vm0, %v16_v14  ;;  %405 = vmatmul.mubr.msk.f32.gmra.mxu1 %vm31_vm0, %v24_v15 }
  0x14   :  { %395 = vmatprep.mubr.msk.f32.mxu0 %vm31_vm0, %v17_v16  ;;  %407 = vmatprep.mubr.msk.f32.mxu1 %vm31_vm0, %v25_v17 }
  0x17   :  { %396 = vmatmul.mubr.msk.f32.gmra.mxu0 %vm31_vm0, %v18_v18  ;;  %408 = vmatmul.mubr.msk.f32.gmra.mxu1 %vm31_vm0, %v26_v19 }
  0xcb   :  { %v388_v20 = vpop.f32.mrf.mxu0  ;;  %v400_v21 = vpop.f32.mrf.mxu1 }
  0xcc   :  { %v343_v22 = vpack.c.bf16 %v388_v20, %v388_v20  ;;  %v351_v23 = vpack.c.bf16 %v400_v21, %v400_v21 }
  0xcd   :  { %v146_v24 = vpop.f32.mrf.mxu0  ;;  %v186_v25 = vpop.f32.mrf.mxu1 }
  0xce   :  { %291 = vst.msk [vmem:[%s575_s2 + $0x4] sm:$0xf] %vm289_vm1, %v343_v22  ;;  %299 = vst.msk [vmem:[%s575_s2 + $0x24] sm:$0xf] %vm289_vm1, %v351_v23  ;;  %v342_v26 = vpack.c.bf16 %v146_v24, %v146_v24  ;;  %v350_v27 = vpack.c.bf16 %v186_v25, %v186_v25 }
  0xcf   :  { %v391_v28 = vpop.f32.mrf.mxu0  ;;  %v403_v29 = vpop.f32.mrf.mxu1 }
  0xd0   :  { %290 = vst.msk [vmem:[%s575_s2] sm:$0xf] %vm289_vm1, %v342_v26  ;;  %298 = vst.msk [vmem:[%s575_s2 + $0x20] sm:$0xf] %vm289_vm1, %v350_v27  ;;  %v345_v30 = vpack.c.bf16 %v391_v28, %v391_v28  ;;  %v353_v31 = vpack.c.bf16 %v403_v29, %v403_v29 }
  0xd1   :  { %v156_v32 = vpop.f32.mrf.mxu0  ;;  %v196_v33 = vpop.f32.mrf.mxu1 }
  0xd2   :  { %293 = vst.msk [vmem:[%s575_s2 + $0xc] sm:$0xf] %vm289_vm1, %v345_v30  ;;  %301 = vst.msk [vmem:[%s575_s2 + $0x2c] sm:$0xf] %vm289_vm1, %v353_v31  ;;  %v344_v34 = vpack.c.bf16 %v156_v32, %v156_v32  ;;  %v352_v35 = vpack.c.bf16 %v196_v33, %v196_v33 }
  0xd3   :  { %v394_v36 = vpop.f32.mrf.mxu0  ;;  %v406_v37 = vpop.f32.mrf.mxu1 }
  0xd4   :  { %292 = vst.msk [vmem:[%s575_s2 + $0x8] sm:$0xf] %vm289_vm1, %v344_v34  ;;  %300 = vst.msk [vmem:[%s575_s2 + $0x28] sm:$0xf] %vm289_vm1, %v352_v35  ;;  %v347_v38 = vpack.c.bf16 %v394_v36, %v394_v36  ;;  %v355_v39 = vpack.c.bf16 %v406_v37, %v406_v37 }
  0xd5   :  { %v166_v40 = vpop.f32.mrf.mxu0  ;;  %v206_v41 = vpop.f32.mrf.mxu1 }
  0xd6   :  { %295 = vst.msk [vmem:[%s575_s2 + $0x14] sm:$0xf] %vm289_vm1, %v347_v38  ;;  %303 = vst.msk [vmem:[%s575_s2 + $0x34] sm:$0xf] %vm289_vm1, %v355_v39  ;;  %v346_v42 = vpack.c.bf16 %v166_v40, %v166_v40  ;;  %v354_v43 = vpack.c.bf16 %v206_v41, %v206_v41 }
  0xd7   :  { %v397_v44 = vpop.f32.mrf.mxu0  ;;  %v409_v45 = vpop.f32.mrf.mxu1 }
  0xd8   :  { %294 = vst.msk [vmem:[%s575_s2 + $0x10] sm:$0xf] %vm289_vm1, %v346_v42  ;;  %302 = vst.msk [vmem:[%s575_s2 + $0x30] sm:$0xf] %vm289_vm1, %v354_v43  ;;  %v349_v46 = vpack.c.bf16 %v397_v44, %v397_v44  ;;  %v357_v47 = vpack.c.bf16 %v409_v45, %v409_v45 }
  0xd9   :  { %v176_v48 = vpop.f32.mrf.mxu0  ;;  %v216_v49 = vpop.f32.mrf.mxu1 }
  0xda   :  { %297 = vst.msk [vmem:[%s575_s2 + $0x1c] sm:$0xf] %vm289_vm1, %v349_v46  ;;  %305 = vst.msk [vmem:[%s575_s2 + $0x3c] sm:$0xf] %vm289_vm1, %v357_v47  ;;  %v348_v50 = vpack.c.bf16 %v176_v48, %v176_v48  ;;  %v356_v51 = vpack.c.bf16 %v216_v49, %v216_v49 }
  0xdc   :  { %296 = vst.msk [vmem:[%s575_s2 + $0x18] sm:$0xf] %vm289_vm1, %v348_v50  ;;  %304 = vst.msk [vmem:[%s575_s2 + $0x38] sm:$0xf] %vm289_vm1, %v356_v51 }

// kernel: hyper_encoder_forward.11
= control target key start
LH: loop header
LB: loop body
LE: loop exit
PB: predicated region body
PF: predicated region fallthrough
CT: control target
= control target key end

     0   :  { %v642_v1 = vmov 0   ;;  %vm26_vm0 = vcmask 261120   ;;  %v643_v31 = vmov 0.0   ;;  %s935_s1 = inlined_call_operand.vmem [shape: bf16[128,32], index: 1, kind: input, shape index: {}]   ;;  %s936_s0 = inlined_call_operand.vmem [shape: bf16[128,128], index: 0, kind: input, shape index: {}]   ;;  %s937_s2 = inlined_call_operand.vmem [shape: f32[128,1], index: 2, kind: input, shape index: {}]   ;;  %s938_s3 = inlined_call_operand.vmem [shape: f32[1,32], index: 3, kind: input, shape index: {}]   ;;  %s939_s4 = inlined_call_operand.<no memory space> [shape: f32[1], index: 4, kind: input, shape index: {}]   ;;  %s940_s5 = inlined_call_operand.vmem [shape: f32[128,32], index: 5, kind: output, shape index: {}]  }
   0x1   :  { %v626_v0 = vld [vmem:[%s935_s1 + $0x38] sm:$0xff]   ;;  %625 = vset.pattern.permute.xlu1 %v642_v1  ;;  %624 = vset.pattern.permute.xlu0 %v642_v1  ;;  %v627_v2 = vld [vmem:[%s935_s1 + $0x30] sm:$0xff]   ;;  %v628_v3 = vld [vmem:[%s935_s1 + $0x28] sm:$0xff]   ;;  %29 = vst.msk [vmem:[#allocation2 + $0x10] sm:$0xff] %vm26_vm0, %v643_v31 }
   0x2   :  { %574 = vmatprep.subr.bf16.mxu0 %v626_v0  ;;  %606 = vmatprep.subr.bf16.mxu1 %v626_v0  ;;  %v629_v4 = vld [vmem:[%s935_s1 + $0x20] sm:$0xff]   ;;  %v630_v7 = vld [vmem:[%s935_s1 + $0x18] sm:$0xff]   ;;  %v631_v8 = vld [vmem:[%s935_s1 + $0x10] sm:$0xff]   ;;  %27 = vst.msk [vmem:[#allocation2] sm:$0xff] %vm26_vm0, %v643_v31 }
   0x3   :  { %575 = vmatpush3.bf16.msra.mxu0 %v626_v0  ;;  %614 = vmatpush3.bf16.msra.mxu1 %v626_v0  ;;  %v634_v5 = vld [vmem:[%s936_s0] sm:$0xff]   ;;  %v323_v9 = vld [vmem:[%s937_s2 + $0x10] sm:$0xff]  ;;  %v324_v11 = vld [vmem:[%s937_s2 + $0x18] sm:$0xff]  ;;  %28 = vst.msk [vmem:[#allocation2 + $0x8] sm:$0xff] %vm26_vm0, %v643_v31 }
   0x4   :  { %576 = vmatprep.subr.bf16.mxu0 %v627_v2  ;;  %607 = vmatprep.subr.bf16.mxu1 %v627_v2  ;;  %v635_v6 = vld [vmem:[%s936_s0 + $0x20] sm:$0xff]   ;;  %v322_v12 = vld [vmem:[%s937_s2 + $0x8] sm:$0xff]  ;;  %v328_v17 = vld [vmem:[%s937_s2 + $0x38] sm:$0xff]  ;;  %30 = vst.msk [vmem:[#allocation2 + $0x18] sm:$0xff] %vm26_vm0, %v643_v31 }
   0x5   :  { %590 = vmatprep.mubr.bf16.mxu0 %v634_v5  ;;  %598 = vmatprep.mubr.bf16.mxu1 %v635_v6  ;;  %v321_v10 = vld [vmem:[%s937_s2] sm:$0xff]  ;;  %v632_v13 = vld [vmem:[%s935_s1 + $0x8] sm:$0xff]   ;;  %v327_v18 = vld [vmem:[%s937_s2 + $0x30] sm:$0xff]  ;;  %31 = vst.msk [vmem:[#allocation2 + $0x20] sm:$0xff] %vm26_vm0, %v643_v31 }
   0x6   :  { %365 = vperm.xlu1 %625, %v323_v9   ;;  %355 = vperm.xlu0 %624, %v321_v10   ;;  %v326_v14 = vld [vmem:[%s937_s2 + $0x28] sm:$0xff]  ;;  %v325_v15 = vld [vmem:[%s937_s2 + $0x20] sm:$0xff]  ;;  %v638_v23 = vld [vmem:[%s936_s0 + $0x10] sm:$0xff]   ;;  %32 = vst.msk [vmem:[#allocation2 + $0x28] sm:$0xff] %vm26_vm0, %v643_v31 }
   0x7   :  { %577 = vmatpush3.bf16.msra.mxu0 %v627_v2  ;;  %615 = vmatpush3.bf16.msra.mxu1 %v627_v2  ;;  %v633_v16 = vld [vmem:[%s935_s1] sm:$0xff]   ;;  %v636_v19 = vld [vmem:[%s936_s0 + $0x8] sm:$0xff]   ;;  %v639_v24 = vld [vmem:[%s936_s0 + $0x30] sm:$0xff]   ;;  %33 = vst.msk [vmem:[#allocation2 + $0x30] sm:$0xff] %vm26_vm0, %v643_v31 }
   0x8   :  { %578 = vmatprep.subr.bf16.mxu0 %v628_v3  ;;  %608 = vmatprep.subr.bf16.mxu1 %v628_v3  ;;  %v637_v20 = vld [vmem:[%s936_s0 + $0x28] sm:$0xff]   ;;  %v329_v22 = vld [vmem:[%s937_s2 + $0x40] sm:$0xff]  ;;  %v332_v25 = vld [vmem:[%s937_s2 + $0x58] sm:$0xff]  ;;  %34 = vst.msk [vmem:[#allocation2 + $0x38] sm:$0xff] %vm26_vm0, %v643_v31 }
   0x9   :  { %v330_v21 = vld [vmem:[%s937_s2 + $0x48] sm:$0xff]  ;;  %v331_v26 = vld [vmem:[%s937_s2 + $0x50] sm:$0xff]  ;;  %v640_v27 = vld [vmem:[%s936_s0 + $0x18] sm:$0xff]   ;;  %35 = vst.msk [vmem:[#allocation2 + $0x40] sm:$0xff] %vm26_vm0, %v643_v31 }
   0xa   :  { %370 = vperm.xlu1 %625, %v324_v11   ;;  %360 = vperm.xlu0 %624, %v322_v12   ;;  %v641_v28 = vld [vmem:[%s936_s0 + $0x38] sm:$0xff]   ;;  %v334_v29 = vld [vmem:[%s937_s2 + $0x68] sm:$0xff]  ;;  %v333_v30 = vld [vmem:[%s937_s2 + $0x60] sm:$0xff]  ;;  %36 = vst.msk [vmem:[#allocation2 + $0x48] sm:$0xff] %vm26_vm0, %v643_v31 }
   0xb   :  { %579 = vmatpush3.bf16.msra.mxu0 %v628_v3  ;;  %616 = vmatpush3.bf16.msra.mxu1 %v628_v3  ;;  %37 = vst.msk [vmem:[#allocation2 + $0x50] sm:$0xff] %vm26_vm0, %v643_v31  ;;  %38 = vst.msk [vmem:[#allocation2 + $0x58] sm:$0xff] %vm26_vm0, %v643_v31  ;;  %v336_v32 = vld [vmem:[%s937_s2 + $0x78] sm:$0xff]  ;;  %v335_v33 = vld [vmem:[%s937_s2 + $0x70] sm:$0xff] }
   0xc   :  { %580 = vmatprep.subr.bf16.mxu0 %v629_v4  ;;  %609 = vmatprep.subr.bf16.mxu1 %v629_v4  ;;  %39 = vst.msk [vmem:[#allocation2 + $0x60] sm:$0xff] %vm26_vm0, %v643_v31  ;;  %40 = vst.msk [vmem:[#allocation2 + $0x68] sm:$0xff] %vm26_vm0, %v643_v31  ;;  %v77_v41 = vld [vmem:[#allocation2 + $0x10] sm:$0xff]  ;;  %v75_v45 = vld [vmem:[#allocation2] sm:$0xff] }
   0xd   :  { %41 = vst.msk [vmem:[#allocation2 + $0x70] sm:$0xff] %vm26_vm0, %v643_v31  ;;  %42 = vst.msk [vmem:[#allocation2 + $0x78] sm:$0xff] %vm26_vm0, %v643_v31  ;;  %v78_v53 = vld [vmem:[#allocation2 + $0x18] sm:$0xff]  ;;  %v76_v59 = vld [vmem:[#allocation2 + $0x8] sm:$0xff] }
   0xe   :  { %380 = vperm.xlu1 %625, %v326_v14   ;;  %375 = vperm.xlu0 %624, %v325_v15   ;;  %v81_v1 = vld [vmem:[#allocation2 + $0x30] sm:$0xff]  ;;  %v79_v9 = vld [vmem:[#allocation2 + $0x20] sm:$0xff] }
   0xf   :  { %581 = vmatpush3.bf16.msra.mxu0 %v629_v4  ;;  %617 = vmatpush3.bf16.msra.mxu1 %v629_v4  ;;  %v811_v14 = vld [vmem:[%s938_s3] ss:$0 sm:$0xff] }
  0x10   :  { %582 = vmatprep.subr.bf16.mxu0 %v630_v7  ;;  %610 = vmatprep.subr.bf16.mxu1 %v630_v7  ;;  %v83_v46 = vld [vmem:[#allocation2 + $0x40] sm:$0xff] }
  0x11   :  { %v84_v60 = vld [vmem:[#allocation2 + $0x48] sm:$0xff] }
  0x12   :  { %390 = vperm.xlu1 %625, %v328_v17   ;;  %385 = vperm.xlu0 %624, %v327_v18   ;;  %v85_v42 = vld [vmem:[#allocation2 + $0x50] sm:$0xff]  ;;  %v86_v54 = vld [vmem:[#allocation2 + $0x58] sm:$0xff] }
  0x13   :  { %583 = vmatpush3.bf16.msra.mxu0 %v630_v7  ;;  %618 = vmatpush3.bf16.msra.mxu1 %v630_v7  ;;  %v87_v10 = vld [vmem:[#allocation2 + $0x60] sm:$0xff] }
  0x14   :  { %584 = vmatprep.subr.bf16.mxu0 %v631_v8  ;;  %611 = vmatprep.subr.bf16.mxu1 %v631_v8  ;;  %v89_v2 = vld [vmem:[#allocation2 + $0x70] sm:$0xff] }
  0x16   :  { %400 = vperm.xlu1 %625, %v330_v21   ;;  %395 = vperm.xlu0 %624, %v329_v22   ;;  %v82_v22 = vld [vmem:[#allocation2 + $0x38] sm:$0xff] }
  0x17   :  { %585 = vmatpush3.bf16.msra.mxu0 %v631_v8  ;;  %619 = vmatpush3.bf16.msra.mxu1 %v631_v8 }
  0x18   :  { %586 = vmatprep.subr.bf16.mxu0 %v632_v13  ;;  %612 = vmatprep.subr.bf16.mxu1 %v632_v13 }
  0x1a   :  { %410 = vperm.xlu1 %625, %v332_v25   ;;  %405 = vperm.xlu0 %624, %v331_v26  }
  0x1b   :  { %587 = vmatpush3.bf16.msra.mxu0 %v632_v13  ;;  %620 = vmatpush3.bf16.msra.mxu1 %v632_v13 }
  0x1c   :  { %588 = vmatprep.subr.bf16.mxu0 %v633_v16  ;;  %613 = vmatprep.subr.bf16.mxu1 %v633_v16 }
  0x1e   :  { %420 = vperm.xlu1 %625, %v334_v29   ;;  %415 = vperm.xlu0 %624, %v333_v30  }
  0x1f   :  { %589 = vmatpush3.bf16.msra.mxu0 %v633_v16  ;;  %621 = vmatpush3.bf16.msra.mxu1 %v633_v16 }
  0x22   :  { %591 = vmatmul.mubr.bf16.vlgmr.msra.gmra.mxu0 %v636_v19  ;;  %599 = vmatmul.mubr.bf16.vlgmr.msra.gmra.mxu1 %v637_v20 }
  0x23   :  { %594 = vmatprep.mubr.bf16.mxu0 %v638_v23  ;;  %602 = vmatprep.mubr.bf16.mxu1 %v639_v24  ;;  %v90_v23 = vld [vmem:[#allocation2 + $0x78] sm:$0xff]  ;;  %v818_v24 = vstv %s939_s4 }
  0x24   :  { %430 = vperm.xlu1 %625, %v336_v32   ;;  %425 = vperm.xlu0 %624, %v335_v33  }
  0x2a   :  { %595 = vmatmul.mubr.bf16.gmra.mxu0 %v640_v27  ;;  %603 = vmatmul.mubr.bf16.gmra.mxu1 %v641_v28 }
  0x81   :  { %v786_v34 = vpop.permute.xlu0 %355  ;;  %v366_v35 = vpop.permute.xlu1 %365 }
  0x85   :  { %v788_v36 = vpop.permute.xlu0 %360  ;;  %v790_v37 = vpop.permute.xlu1 %370 }
  0x89   :  { %v792_v38 = vpop.permute.xlu0 %375  ;;  %v794_v39 = vpop.permute.xlu1 %380 }
  0x8d   :  { %v796_v40 = vpop.permute.xlu0 %385  ;;  %v798_v47 = vpop.permute.xlu1 %390 }
  0x91   :  { %v396_v48 = vpop.permute.xlu0 %395  ;;  %v401_v3 = vpop.permute.xlu1 %400 }
  0x95   :  { %v406_v4 = vpop.permute.xlu0 %405  ;;  %v411_v29 = vpop.permute.xlu1 %410 }
  0x99   :  { %v820_v30 = vpop.permute.xlu0 %415 }
  0xe2   :  { %v592_v43 = vpop.f32.mrf.mxu0  ;;  %v600_v44 = vpop.f32.mrf.mxu1 }
  0xe3   :  { %v286_v49 = vadd.f32 %v592_v43, %v77_v41  ;;  %v294_v50 = vadd.f32 %v600_v44, %v85_v42 }
  0xe4   :  { %v221_v51 = vpop.f32.mrf.mxu0  ;;  %v253_v52 = vpop.f32.mrf.mxu1 }
  0xe5   :  { %303 = vst.msk [vmem:[#allocation2 + $0x10] sm:$0xff] %vm26_vm0, %v286_v49  ;;  %311 = vst.msk [vmem:[#allocation2 + $0x50] sm:$0xff] %vm26_vm0, %v294_v50  ;;  %v284_v55 = vadd.f32 %v221_v51, %v75_v45  ;;  %v292_v56 = vadd.f32 %v253_v52, %v83_v46 }
  0xe6   :  { %v593_v57 = vpop.f32.mrf.mxu0  ;;  %v601_v58 = vpop.f32.mrf.mxu1 }
  0xe7   :  { %301 = vst.msk [vmem:[#allocation2] sm:$0xff] %vm26_vm0, %v284_v55  ;;  %309 = vst.msk [vmem:[#allocation2 + $0x40] sm:$0xff] %vm26_vm0, %v292_v56  ;;  %v287_v61 = vadd.f32 %v593_v57, %v78_v53  ;;  %v295_v62 = vadd.f32 %v601_v58, %v86_v54 }
  0xe8   :  { %v224_v63 = vpop.f32.mrf.mxu0  ;;  %v256_v0 = vpop.f32.mrf.mxu1 }
  0xe9   :  { %304 = vst.msk [vmem:[#allocation2 + $0x18] sm:$0xff] %vm26_vm0, %v287_v61  ;;  %312 = vst.msk [vmem:[#allocation2 + $0x58] sm:$0xff] %vm26_vm0, %v295_v62  ;;  %v285_v5 = vadd.f32 %v224_v63, %v76_v59  ;;  %v293_v6 = vadd.f32 %v256_v0, %v84_v60  ;;  %v426_v60 = vpop.permute.xlu0 %425 }
  0xea   :  { %v596_v7 = vpop.f32.mrf.mxu0  ;;  %v604_v8 = vpop.f32.mrf.mxu1 }
  0xeb   :  { %302 = vst.msk [vmem:[#allocation2 + $0x8] sm:$0xff] %vm26_vm0, %v285_v5  ;;  %310 = vst.msk [vmem:[#allocation2 + $0x48] sm:$0xff] %vm26_vm0, %v293_v6  ;;  %v290_v11 = vadd.f32 %v596_v7, %v81_v1  ;;  %v298_v12 = vadd.f32 %v604_v8, %v89_v2 }
  0xec   :  { %v339_v13 = vld [vmem:[#allocation2 + $0x10] sm:$0xff]  ;;  %v237_v16 = vpop.f32.mrf.mxu0  ;;  %v269_v17 = vpop.f32.mrf.mxu1 }
  0xed   :  { %v347_v15 = vld [vmem:[#allocation2 + $0x50] sm:$0xff]  ;;  %v435_v18 = vmul.f32 %v366_v35, %v339_v13  ;;  %307 = vst.msk [vmem:[#allocation2 + $0x30] sm:$0xff] %vm26_vm0, %v290_v11  ;;  %315 = vst.msk [vmem:[#allocation2 + $0x70] sm:$0xff] %vm26_vm0, %v298_v12  ;;  %v288_v20 = vadd.f32 %v237_v16, %v79_v9  ;;  %v296_v21 = vadd.f32 %v269_v17, %v87_v10 }
  0xee   :  { %v443_v19 = vmul.f32 %v406_v4, %v347_v15  ;;  %v337_v25 = vld [vmem:[#allocation2] sm:$0xff]  ;;  %v597_v27 = vpop.f32.mrf.mxu0  ;;  %v605_v28 = vpop.f32.mrf.mxu1 }
  0xef   :  { %v345_v26 = vld [vmem:[#allocation2 + $0x40] sm:$0xff]  ;;  %v458_v31 = vadd.f32 %v811_v14, %v435_v18  ;;  %v433_v33 = vmul.f32 %v786_v34, %v337_v25  ;;  %305 = vst.msk [vmem:[#allocation2 + $0x20] sm:$0xff] %vm26_vm0, %v288_v20  ;;  %313 = vst.msk [vmem:[#allocation2 + $0x60] sm:$0xff] %vm26_vm0, %v296_v21  ;;  %v291_v43 = vadd.f32 %v597_v27, %v82_v22  ;;  %v80_v21 = vld [vmem:[#allocation2 + $0x28] sm:$0xff] }
  0xf0   :  { %v466_v32 = vadd.f32 %v811_v14, %v443_v19  ;;  %v441_v35 = vmul.f32 %v396_v48, %v345_v26  ;;  %v340_v41 = vld [vmem:[#allocation2 + $0x18] sm:$0xff]  ;;  %v299_v44 = vadd.f32 %v605_v28, %v90_v23  ;;  %v240_v22 = vpop.f32.mrf.mxu0  ;;  %v88_v23 = vld [vmem:[#allocation2 + $0x68] sm:$0xff]  ;;  %v272_v25 = vpop.f32.mrf.mxu1 }
  0xf1   :  { %v348_v42 = vld [vmem:[#allocation2 + $0x58] sm:$0xff]  ;;  %vm474_vm1 = vcmp.ge.f32.partialorder %v458_v31, 0.0  ;;  %v491_v45 = vmul.f32 %v818_v24, %v458_v31  ;;  %v456_v49 = vadd.f32 %v811_v14, %v433_v33  ;;  %v436_v34 = vmul.f32 %v790_v37, %v340_v41  ;;  %308 = vst.msk [vmem:[#allocation2 + $0x38] sm:$0xff] %vm26_vm0, %v291_v43 }
  0xf2   :  { %vm482_vm2 = vcmp.ge.f32.partialorder %v466_v32, 0.0  ;;  %v499_v46 = vmul.f32 %v818_v24, %v466_v32  ;;  %v464_v50 = vadd.f32 %v811_v14, %v441_v35  ;;  %v444_v48 = vmul.f32 %v411_v29, %v348_v42  ;;  %v338_v51 = vld [vmem:[#allocation2 + $0x8] sm:$0xff]  ;;  %316 = vst.msk [vmem:[#allocation2 + $0x78] sm:$0xff] %vm26_vm0, %v299_v44 }
  0xf3   :  { %v346_v52 = vld [vmem:[#allocation2 + $0x48] sm:$0xff]  ;;  %v507_v53 = vsel %vm474_vm1, %v458_v31, %v491_v45  ;;  %v434_v55 = vmul.f32 %v788_v36, %v338_v51  ;;  %vm472_vm3 = vcmp.ge.f32.partialorder %v456_v49, 0.0  ;;  %v489_v37 = vmul.f32 %v818_v24, %v456_v49  ;;  %v845_v36 = vpop.permute.xlu1 %420 }
  0xf4   :  { %v515_v54 = vsel %vm482_vm2, %v466_v32, %v499_v46  ;;  %v442_v56 = vmul.f32 %v401_v3, %v346_v52  ;;  %523 = vst.msk [vmem:[%s940_s5 + $0x10] sm:$0xff] %vm26_vm0, %v507_v53  ;;  %vm480_vm4 = vcmp.ge.f32.partialorder %v464_v50, 0.0  ;;  %v497_v57 = vmul.f32 %v818_v24, %v464_v50  ;;  %v343_v58 = vld [vmem:[#allocation2 + $0x30] sm:$0xff] }
  0xf5   :  { %531 = vst.msk [vmem:[%s940_s5 + $0x50] sm:$0xff] %vm26_vm0, %v515_v54  ;;  %v351_v59 = vld [vmem:[#allocation2 + $0x70] sm:$0xff]  ;;  %v459_v61 = vadd.f32 %v811_v14, %v436_v34  ;;  %v467_v62 = vadd.f32 %v811_v14, %v444_v48  ;;  %v457_v63 = vadd.f32 %v811_v14, %v434_v55  ;;  %v505_v1 = vsel %vm472_vm3, %v456_v49, %v489_v37 }
  0xf6   :  { %v465_v0 = vadd.f32 %v811_v14, %v442_v56  ;;  %v513_v2 = vsel %vm480_vm4, %v464_v50, %v497_v57  ;;  %v439_v3 = vmul.f32 %v796_v40, %v343_v58  ;;  %v447_v4 = vmul.f32 %v426_v60, %v351_v59  ;;  %521 = vst.msk [vmem:[%s940_s5] sm:$0xff] %vm26_vm0, %v505_v1  ;;  %v341_v7 = vld [vmem:[#allocation2 + $0x20] sm:$0xff] }
  0xf7   :  { %529 = vst.msk [vmem:[%s940_s5 + $0x40] sm:$0xff] %vm26_vm0, %v513_v2  ;;  %vm475_vm5 = vcmp.ge.f32.partialorder %v459_v61, 0.0  ;;  %v492_v5 = vmul.f32 %v818_v24, %v459_v61  ;;  %vm483_vm6 = vcmp.ge.f32.partialorder %v467_v62, 0.0  ;;  %v500_v6 = vmul.f32 %v818_v24, %v467_v62  ;;  %v349_v8 = vld [vmem:[#allocation2 + $0x60] sm:$0xff]  ;;  %v431_v26 = vpop.permute.xlu1 %430 }
  0xf8   :  { %vm473_vm7 = vcmp.ge.f32.partialorder %v457_v63, 0.0  ;;  %v490_v40 = vmul.f32 %v818_v24, %v457_v63  ;;  %vm481_vm8 = vcmp.ge.f32.partialorder %v465_v0, 0.0  ;;  %v498_v9 = vmul.f32 %v818_v24, %v465_v0  ;;  %v344_v15 = vld [vmem:[#allocation2 + $0x38] sm:$0xff] }
  0xf9   :  { %v508_v10 = vsel %vm475_vm5, %v459_v61, %v492_v5  ;;  %v516_v11 = vsel %vm483_vm6, %v467_v62, %v500_v6  ;;  %v462_v12 = vadd.f32 %v811_v14, %v439_v3  ;;  %v470_v13 = vadd.f32 %v811_v14, %v447_v4  ;;  %v352_v16 = vld [vmem:[#allocation2 + $0x78] sm:$0xff] }
  0xfa   :  { %524 = vst.msk [vmem:[%s940_s5 + $0x18] sm:$0xff] %vm26_vm0, %v508_v10  ;;  %532 = vst.msk [vmem:[%s940_s5 + $0x58] sm:$0xff] %vm26_vm0, %v516_v11  ;;  %v506_v17 = vsel %vm473_vm7, %v457_v63, %v490_v40  ;;  %v514_v18 = vsel %vm481_vm8, %v465_v0, %v498_v9  ;;  %v437_v19 = vmul.f32 %v792_v38, %v341_v7 }
  0xfb   :  { %v445_v20 = vmul.f32 %v820_v30, %v349_v8  ;;  %522 = vst.msk [vmem:[%s940_s5 + $0x8] sm:$0xff] %vm26_vm0, %v506_v17  ;;  %530 = vst.msk [vmem:[%s940_s5 + $0x48] sm:$0xff] %vm26_vm0, %v514_v18  ;;  %vm478_vm9 = vcmp.ge.f32.partialorder %v462_v12, 0.0  ;;  %v495_v38 = vmul.f32 %v818_v24, %v462_v12  ;;  %vm486_vm10 = vcmp.ge.f32.partialorder %v470_v13, 0.0 }
  0xfc   :  { %v503_v27 = vmul.f32 %v818_v24, %v470_v13  ;;  %v460_v28 = vadd.f32 %v811_v14, %v437_v19  ;;  %v440_v30 = vmul.f32 %v798_v47, %v344_v15  ;;  %v448_v31 = vmul.f32 %v431_v26, %v352_v16 }
  0xfd   :  { %v468_v29 = vadd.f32 %v811_v14, %v445_v20  ;;  %v511_v32 = vsel %vm478_vm9, %v462_v12, %v495_v38  ;;  %v289_v35 = vadd.f32 %v240_v22, %v80_v21  ;;  %v297_v41 = vadd.f32 %v272_v25, %v88_v23 }
  0xfe   :  { %v519_v33 = vsel %vm486_vm10, %v470_v13, %v503_v27  ;;  %527 = vst.msk [vmem:[%s940_s5 + $0x30] sm:$0xff] %vm26_vm0, %v511_v32  ;;  %vm476_vm11 = vcmp.ge.f32.partialorder %v460_v28, 0.0  ;;  %v493_v42 = vmul.f32 %v818_v24, %v460_v28  ;;  %v463_v43 = vadd.f32 %v811_v14, %v440_v30 }
  0xff   :  { %535 = vst.msk [vmem:[%s940_s5 + $0x70] sm:$0xff] %vm26_vm0, %v519_v33  ;;  %vm484_vm12 = vcmp.ge.f32.partialorder %v468_v29, 0.0  ;;  %v501_v47 = vmul.f32 %v818_v24, %v468_v29  ;;  %v471_v44 = vadd.f32 %v811_v14, %v448_v31  ;;  %306 = vst.msk [vmem:[#allocation2 + $0x28] sm:$0xff] %vm26_vm0, %v289_v35 }
 0x100   :  { %314 = vst.msk [vmem:[#allocation2 + $0x68] sm:$0xff] %vm26_vm0, %v297_v41  ;;  %v509_v45 = vsel %vm476_vm11, %v460_v28, %v493_v42  ;;  %vm479_vm13 = vcmp.ge.f32.partialorder %v463_v43, 0.0  ;;  %v496_v49 = vmul.f32 %v818_v24, %v463_v43 }
 0x101   :  { %v517_v46 = vsel %vm484_vm12, %v468_v29, %v501_v47  ;;  %525 = vst.msk [vmem:[%s940_s5 + $0x20] sm:$0xff] %vm26_vm0, %v509_v45  ;;  %vm487_vm14 = vcmp.ge.f32.partialorder %v471_v44, 0.0  ;;  %v504_v50 = vmul.f32 %v818_v24, %v471_v44 }
 0x102   :  { %533 = vst.msk [vmem:[%s940_s5 + $0x60] sm:$0xff] %vm26_vm0, %v517_v46  ;;  %v512_v34 = vsel %vm479_vm13, %v463_v43, %v496_v49 }
 0x103   :  { %v520_v48 = vsel %vm487_vm14, %v471_v44, %v504_v50  ;;  %528 = vst.msk [vmem:[%s940_s5 + $0x38] sm:$0xff] %vm26_vm0, %v512_v34 }
 0x104   :  { %536 = vst.msk [vmem:[%s940_s5 + $0x78] sm:$0xff] %vm26_vm0, %v520_v48 }
 0x106   :  { %v342_v51 = vld [vmem:[#allocation2 + $0x28] sm:$0xff] }
 0x107   :  { %v350_v52 = vld [vmem:[#allocation2 + $0x68] sm:$0xff]  ;;  %v438_v53 = vmul.f32 %v794_v39, %v342_v51 }
 0x108   :  { %v446_v54 = vmul.f32 %v845_v36, %v350_v52 }
 0x109   :  { %v461_v55 = vadd.f32 %v811_v14, %v438_v53 }
 0x10a   :  { %v469_v56 = vadd.f32 %v811_v14, %v446_v54 }
 0x10b   :  { %vm477_vm15 = vcmp.ge.f32.partialorder %v461_v55, 0.0  ;;  %v494_v37 = vmul.f32 %v818_v24, %v461_v55 }
 0x10c   :  { %vm485_vm1 = vcmp.ge.f32.partialorder %v469_v56, 0.0  ;;  %v502_v57 = vmul.f32 %v818_v24, %v469_v56 }
 0x10d   :  { %v510_v58 = vsel %vm477_vm15, %v461_v55, %v494_v37 }
 0x10e   :  { %v518_v59 = vsel %vm485_vm1, %v469_v56, %v502_v57  ;;  %526 = vst.msk [vmem:[%s940_s5 + $0x28] sm:$0xff] %vm26_vm0, %v510_v58 }
 0x10f   :  { %534 = vst.msk [vmem:[%s940_s5 + $0x68] sm:$0xff] %vm26_vm0, %v518_v59 }

// kernel: hyper_encoder_forward.9
= control target key start
LH: loop header
LB: loop body
LE: loop exit
PB: predicated region body
PF: predicated region fallthrough
CT: control target
= control target key end

     0   :  { %v658_v1 = vmov 0   ;;  %vm26_vm0 = vcmask 261120   ;;  %v659_v32 = vmov 0.0   ;;  %s944_s0 = inlined_call_operand.vmem [shape: bf16[128,128], index: 0, kind: input, shape index: {}]   ;;  %s945_s1 = inlined_call_operand.vmem [shape: bf16[128,32], index: 1, kind: input, shape index: {}]   ;;  %s946_s2 = inlined_call_operand.vmem [shape: f32[128,1], index: 2, kind: input, shape index: {}]   ;;  %s947_s3 = inlined_call_operand.vmem [shape: f32[1,32], index: 3, kind: input, shape index: {}]   ;;  %s948_s4 = inlined_call_operand.<no memory space> [shape: f32[1], index: 4, kind: input, shape index: {}]   ;;  %s949_s5 = inlined_call_operand.vmem [shape: f32[128,32], index: 5, kind: output, shape index: {}]  }
   0x1   :  { %v642_v0 = vld [vmem:[%s944_s0] sm:$0xff]   ;;  %640 = vset.pattern.permute.xlu1 %v658_v1  ;;  %v643_v2 = vld [vmem:[%s944_s0 + $0x8] sm:$0xff]   ;;  %v644_v3 = vld [vmem:[%s944_s0 + $0x10] sm:$0xff]   ;;  %29 = vst.msk [vmem:[#allocation2 + $0x10] sm:$0xff] %vm26_vm0, %v659_v32 }
   0x2   :  { %139 = vxpose.xlu0.c.b16.start [1/8] %v642_v0, 128  ;;  %v650_v4 = vld [vmem:[%s945_s1 + $0x38] sm:$0xff]   ;;  %v651_v5 = vld [vmem:[%s945_s1 + $0x30] sm:$0xff]   ;;  %v652_v7 = vld [vmem:[%s945_s1 + $0x28] sm:$0xff]   ;;  %27 = vst.msk [vmem:[#allocation2] sm:$0xff] %vm26_vm0, %v659_v32 }
   0x3   :  { %v645_v6 = vld [vmem:[%s944_s0 + $0x18] sm:$0xff]   ;;  %590 = vmatprep.subr.bf16.mxu0 %v650_v4  ;;  %622 = vmatprep.subr.bf16.mxu1 %v650_v4  ;;  %v646_v8 = vld [vmem:[%s944_s0 + $0x20] sm:$0xff]   ;;  %v647_v11 = vld [vmem:[%s944_s0 + $0x28] sm:$0xff]   ;;  %28 = vst.msk [vmem:[#allocation2 + $0x8] sm:$0xff] %vm26_vm0, %v659_v32 }
   0x4   :  { %591 = vmatpush3.bf16.msra.mxu0 %v650_v4  ;;  %630 = vmatpush3.bf16.msra.mxu1 %v650_v4  ;;  %v653_v9 = vld [vmem:[%s945_s1 + $0x20] sm:$0xff]   ;;  %v338_v12 = vld [vmem:[%s946_s2 + $0x8] sm:$0xff]  ;;  %v654_v13 = vld [vmem:[%s945_s1 + $0x18] sm:$0xff]   ;;  %30 = vst.msk [vmem:[#allocation2 + $0x18] sm:$0xff] %vm26_vm0, %v659_v32 }
   0x5   :  { %592 = vmatprep.subr.bf16.mxu0 %v651_v5  ;;  %623 = vmatprep.subr.bf16.mxu1 %v651_v5  ;;  %v337_v10 = vld [vmem:[%s946_s2] sm:$0xff]  ;;  %v648_v14 = vld [vmem:[%s944_s0 + $0x30] sm:$0xff]   ;;  %v649_v17 = vld [vmem:[%s944_s0 + $0x38] sm:$0xff]   ;;  %31 = vst.msk [vmem:[#allocation2 + $0x20] sm:$0xff] %vm26_vm0, %v659_v32 }
   0x6   :  { %140 = vxpose.xlu0.c.b16.cont [2/8] %v643_v2, 128  ;;  %371 = vperm.xlu1 %640, %v337_v10   ;;  %v339_v15 = vld [vmem:[%s946_s2 + $0x10] sm:$0xff]  ;;  %v340_v18 = vld [vmem:[%s946_s2 + $0x18] sm:$0xff]  ;;  %v656_v19 = vld [vmem:[%s945_s1 + $0x8] sm:$0xff]   ;;  %32 = vst.msk [vmem:[#allocation2 + $0x28] sm:$0xff] %vm26_vm0, %v659_v32 }
   0x7   :  { %v655_v16 = vld [vmem:[%s945_s1 + $0x10] sm:$0xff]   ;;  %v341_v20 = vld [vmem:[%s946_s2 + $0x20] sm:$0xff]  ;;  %v342_v22 = vld [vmem:[%s946_s2 + $0x28] sm:$0xff]  ;;  %33 = vst.msk [vmem:[#allocation2 + $0x30] sm:$0xff] %vm26_vm0, %v659_v32 }
   0x8   :  { %593 = vmatpush3.bf16.msra.mxu0 %v651_v5  ;;  %631 = vmatpush3.bf16.msra.mxu1 %v651_v5  ;;  %v657_v21 = vld [vmem:[%s945_s1] sm:$0xff]   ;;  %v343_v24 = vld [vmem:[%s946_s2 + $0x30] sm:$0xff]  ;;  %v344_v26 = vld [vmem:[%s946_s2 + $0x38] sm:$0xff]  ;;  %34 = vst.msk [vmem:[#allocation2 + $0x38] sm:$0xff] %vm26_vm0, %v659_v32 }
   0x9   :  { %594 = vmatprep.subr.bf16.mxu0 %v652_v7  ;;  %624 = vmatprep.subr.bf16.mxu1 %v652_v7  ;;  %v345_v23 = vld [vmem:[%s946_s2 + $0x40] sm:$0xff]  ;;  %v351_v27 = vld [vmem:[%s946_s2 + $0x70] sm:$0xff]  ;;  %v346_v28 = vld [vmem:[%s946_s2 + $0x48] sm:$0xff]  ;;  %35 = vst.msk [vmem:[#allocation2 + $0x40] sm:$0xff] %vm26_vm0, %v659_v32 }
   0xa   :  { %141 = vxpose.xlu0.c.b16.cont [3/8] %v644_v3, 128  ;;  %376 = vperm.xlu1 %640, %v338_v12   ;;  %v349_v25 = vld [vmem:[%s946_s2 + $0x60] sm:$0xff]  ;;  %v347_v29 = vld [vmem:[%s946_s2 + $0x50] sm:$0xff]  ;;  %v348_v30 = vld [vmem:[%s946_s2 + $0x58] sm:$0xff]  ;;  %36 = vst.msk [vmem:[#allocation2 + $0x48] sm:$0xff] %vm26_vm0, %v659_v32 }
   0xb   :  { %v350_v31 = vld [vmem:[%s946_s2 + $0x68] sm:$0xff]  ;;  %37 = vst.msk [vmem:[#allocation2 + $0x50] sm:$0xff] %vm26_vm0, %v659_v32  ;;  %38 = vst.msk [vmem:[#allocation2 + $0x58] sm:$0xff] %vm26_vm0, %v659_v32  ;;  %v352_v33 = vld [vmem:[%s946_s2 + $0x78] sm:$0xff] }
   0xc   :  { %595 = vmatpush3.bf16.msra.mxu0 %v652_v7  ;;  %632 = vmatpush3.bf16.msra.mxu1 %v652_v7  ;;  %39 = vst.msk [vmem:[#allocation2 + $0x60] sm:$0xff] %vm26_vm0, %v659_v32  ;;  %40 = vst.msk [vmem:[#allocation2 + $0x68] sm:$0xff] %vm26_vm0, %v659_v32  ;;  %v77_v48 = vld [vmem:[#allocation2 + $0x10] sm:$0xff]  ;;  %v75_v50 = vld [vmem:[#allocation2] sm:$0xff] }
   0xd   :  { %596 = vmatprep.subr.bf16.mxu0 %v653_v9  ;;  %625 = vmatprep.subr.bf16.mxu1 %v653_v9  ;;  %41 = vst.msk [vmem:[#allocation2 + $0x70] sm:$0xff] %vm26_vm0, %v659_v32  ;;  %42 = vst.msk [vmem:[#allocation2 + $0x78] sm:$0xff] %vm26_vm0, %v659_v32  ;;  %v78_v54 = vld [vmem:[#allocation2 + $0x18] sm:$0xff]  ;;  %v76_v57 = vld [vmem:[#allocation2 + $0x8] sm:$0xff] }
   0xe   :  { %142 = vxpose.xlu0.c.b16.cont [4/8] %v645_v6, 128  ;;  %381 = vperm.xlu1 %640, %v339_v15   ;;  %v81_v60 = vld [vmem:[#allocation2 + $0x30] sm:$0xff]  ;;  %v79_v0 = vld [vmem:[#allocation2 + $0x20] sm:$0xff] }
   0xf   :  { %v821_v3 = vld [vmem:[%s947_s3] ss:$0 sm:$0xff]  ;;  %v82_v5 = vld [vmem:[#allocation2 + $0x38] sm:$0xff] }
  0x10   :  { %597 = vmatpush3.bf16.msra.mxu0 %v653_v9  ;;  %633 = vmatpush3.bf16.msra.mxu1 %v653_v9 }
  0x11   :  { %598 = vmatprep.subr.bf16.mxu0 %v654_v13  ;;  %626 = vmatprep.subr.bf16.mxu1 %v654_v13 }
  0x12   :  { %143 = vxpose.xlu0.c.b16.cont [5/8] %v646_v8, 128  ;;  %386 = vperm.xlu1 %640, %v340_v18   ;;  %v827_v8 = vstv %s948_s4 }
  0x14   :  { %599 = vmatpush3.bf16.msra.mxu0 %v654_v13  ;;  %634 = vmatpush3.bf16.msra.mxu1 %v654_v13 }
  0x15   :  { %600 = vmatprep.subr.bf16.mxu0 %v655_v16  ;;  %627 = vmatprep.subr.bf16.mxu1 %v655_v16 }
  0x16   :  { %144 = vxpose.xlu0.c.b16.cont [6/8] %v647_v11, 128  ;;  %391 = vperm.xlu1 %640, %v341_v20  }
  0x18   :  { %601 = vmatpush3.bf16.msra.mxu0 %v655_v16  ;;  %635 = vmatpush3.bf16.msra.mxu1 %v655_v16 }
  0x19   :  { %602 = vmatprep.subr.bf16.mxu0 %v656_v19  ;;  %628 = vmatprep.subr.bf16.mxu1 %v656_v19 }
  0x1a   :  { %145 = vxpose.xlu0.c.b16.cont [7/8] %v648_v14, 128  ;;  %396 = vperm.xlu1 %640, %v342_v22   ;;  %v80_v14 = vld [vmem:[#allocation2 + $0x28] sm:$0xff] }
  0x1c   :  { %603 = vmatpush3.bf16.msra.mxu0 %v656_v19  ;;  %636 = vmatpush3.bf16.msra.mxu1 %v656_v19 }
  0x1d   :  { %604 = vmatprep.subr.bf16.mxu0 %v657_v21  ;;  %629 = vmatprep.subr.bf16.mxu1 %v657_v21 }
  0x1e   :  { %146 = vxpose.xlu0.c.b16.end [8/8] %v649_v17, 128  ;;  %401 = vperm.xlu1 %640, %v343_v24  }
  0x20   :  { %605 = vmatpush3.bf16.msra.mxu0 %v657_v21  ;;  %637 = vmatpush3.bf16.msra.mxu1 %v657_v21  ;;  %v85_v21 = vld [vmem:[#allocation2 + $0x50] sm:$0xff] }
  0x22   :  { %406 = vperm.xlu1 %640, %v344_v26  }
  0x26   :  { %416 = vperm.xlu1 %640, %v346_v28   ;;  %v83_v28 = vld [vmem:[#allocation2 + $0x40] sm:$0xff] }
  0x27   :  { %641 = vset.pattern.permute.xlu0 %v658_v1 }
  0x28   :  { %411 = vperm.xlu0 %641, %v345_v23  }
  0x2a   :  { %421 = vperm.xlu1 %640, %v347_v29  }
  0x2c   :  { %431 = vperm.xlu0 %641, %v349_v25  }
  0x2e   :  { %426 = vperm.xlu1 %640, %v348_v30  }
  0x30   :  { %441 = vperm.xlu0 %641, %v351_v27  }
  0x32   :  { %436 = vperm.xlu1 %640, %v350_v31  }
  0x36   :  { %446 = vperm.xlu1 %640, %v352_v33   ;;  %v86_v33 = vld [vmem:[#allocation2 + $0x58] sm:$0xff] }
  0x64   :  { %v147_v34 = vpop.trf.xlu0 }
  0x65   :  { %606 = vmatprep.mubr.bf16.mxu0 %v147_v34 }
  0x68   :  { %v148_v35 = vpop.trf.xlu0 }
  0x69   :  { %607 = vmatmul.mubr.bf16.vlgmr.msra.gmra.mxu0 %v148_v35 }
  0x6c   :  { %v149_v36 = vpop.trf.xlu0 }
  0x6d   :  { %610 = vmatprep.mubr.bf16.mxu0 %v149_v36 }
  0x70   :  { %v150_v37 = vpop.trf.xlu0 }
  0x71   :  { %611 = vmatmul.mubr.bf16.gmra.mxu0 %v150_v37 }
  0x74   :  { %v151_v38 = vpop.trf.xlu0 }
  0x75   :  { %614 = vmatprep.mubr.bf16.mxu1 %v151_v38 }
  0x78   :  { %v152_v39 = vpop.trf.xlu0 }
  0x79   :  { %615 = vmatmul.mubr.bf16.vlgmr.msra.gmra.mxu1 %v152_v39 }
  0x7c   :  { %v153_v40 = vpop.trf.xlu0 }
  0x7d   :  { %618 = vmatprep.mubr.bf16.mxu1 %v153_v40 }
  0x80   :  { %v154_v41 = vpop.trf.xlu0 }
  0x81   :  { %619 = vmatmul.mubr.bf16.gmra.mxu1 %v154_v41  ;;  %v372_v42 = vpop.permute.xlu1 %371 }
  0x85   :  { %v804_v43 = vpop.permute.xlu1 %376 }
  0x89   :  { %v382_v44 = vpop.permute.xlu1 %381 }
  0x8d   :  { %v387_v45 = vpop.permute.xlu1 %386 }
  0x91   :  { %v806_v46 = vpop.permute.xlu1 %391 }
  0x95   :  { %v808_v47 = vpop.permute.xlu1 %396 }
  0x99   :  { %v810_v52 = vpop.permute.xlu1 %401 }
  0x9d   :  { %v815_v62 = vpop.permute.xlu1 %406 }
  0xa1   :  { %v831_v15 = vpop.permute.xlu1 %416 }
  0xa5   :  { %v422_v37 = vpop.permute.xlu1 %421 }
 0x129   :  { %v608_v49 = vpop.f32.mrf.mxu0 }
 0x12a   :  { %v302_v51 = vadd.f32 %v608_v49, %v77_v48  ;;  %v84_v48 = vld [vmem:[#allocation2 + $0x48] sm:$0xff] }
 0x12b   :  { %v237_v53 = vpop.f32.mrf.mxu0 }
 0x12c   :  { %319 = vst.msk [vmem:[#allocation2 + $0x10] sm:$0xff] %vm26_vm0, %v302_v51  ;;  %v300_v55 = vadd.f32 %v237_v53, %v75_v50 }
 0x12d   :  { %v609_v56 = vpop.f32.mrf.mxu0 }
 0x12e   :  { %317 = vst.msk [vmem:[#allocation2] sm:$0xff] %vm26_vm0, %v300_v55  ;;  %v303_v58 = vadd.f32 %v609_v56, %v78_v54  ;;  %v89_v54 = vld [vmem:[#allocation2 + $0x70] sm:$0xff]  ;;  %v412_v55 = vpop.permute.xlu0 %411 }
 0x12f   :  { %v240_v59 = vpop.f32.mrf.mxu0 }
 0x130   :  { %320 = vst.msk [vmem:[#allocation2 + $0x18] sm:$0xff] %vm26_vm0, %v303_v58  ;;  %v301_v61 = vadd.f32 %v240_v59, %v76_v57  ;;  %v87_v59 = vld [vmem:[#allocation2 + $0x60] sm:$0xff] }
 0x131   :  { %v612_v63 = vpop.f32.mrf.mxu0 }
 0x132   :  { %318 = vst.msk [vmem:[#allocation2 + $0x8] sm:$0xff] %vm26_vm0, %v301_v61  ;;  %v306_v1 = vadd.f32 %v612_v63, %v81_v60 }
 0x133   :  { %v355_v2 = vld [vmem:[#allocation2 + $0x10] sm:$0xff]  ;;  %v253_v4 = vpop.f32.mrf.mxu0 }
 0x134   :  { %v451_v6 = vmul.f32 %v382_v44, %v355_v2  ;;  %323 = vst.msk [vmem:[#allocation2 + $0x30] sm:$0xff] %vm26_vm0, %v306_v1  ;;  %v304_v7 = vadd.f32 %v253_v4, %v79_v0  ;;  %v427_v0 = vpop.permute.xlu1 %426 }
 0x135   :  { %v353_v9 = vld [vmem:[#allocation2] sm:$0xff]  ;;  %v613_v10 = vpop.f32.mrf.mxu0 }
 0x136   :  { %v474_v11 = vadd.f32 %v821_v3, %v451_v6  ;;  %v449_v12 = vmul.f32 %v372_v42, %v353_v9  ;;  %321 = vst.msk [vmem:[#allocation2 + $0x20] sm:$0xff] %vm26_vm0, %v304_v7  ;;  %v307_v13 = vadd.f32 %v613_v10, %v82_v5  ;;  %v90_v5 = vld [vmem:[#allocation2 + $0x78] sm:$0xff] }
 0x137   :  { %v356_v16 = vld [vmem:[#allocation2 + $0x18] sm:$0xff]  ;;  %v256_v17 = vpop.f32.mrf.mxu0 }
 0x138   :  { %vm490_vm1 = vcmp.ge.f32.partialorder %v474_v11, 0.0  ;;  %v507_v18 = vmul.f32 %v827_v8, %v474_v11  ;;  %v472_v19 = vadd.f32 %v821_v3, %v449_v12  ;;  %v452_v20 = vmul.f32 %v387_v45, %v356_v16  ;;  %324 = vst.msk [vmem:[#allocation2 + $0x38] sm:$0xff] %vm26_vm0, %v307_v13  ;;  %v88_v13 = vld [vmem:[#allocation2 + $0x68] sm:$0xff] }
 0x139   :  { %v354_v22 = vld [vmem:[#allocation2 + $0x8] sm:$0xff]  ;;  %v305_v23 = vadd.f32 %v256_v17, %v80_v14  ;;  %v616_v24 = vpop.f32.mrf.mxu1 }
 0x13a   :  { %v523_v25 = vsel %vm490_vm1, %v474_v11, %v507_v18  ;;  %vm488_vm2 = vcmp.ge.f32.partialorder %v472_v19, 0.0  ;;  %v505_v26 = vmul.f32 %v827_v8, %v472_v19  ;;  %v475_v27 = vadd.f32 %v821_v3, %v452_v20  ;;  %v432_v18 = vpop.permute.xlu0 %431 }
 0x13b   :  { %539 = vst.msk [vmem:[%s949_s5 + $0x10] sm:$0xff] %vm26_vm0, %v523_v25  ;;  %v450_v29 = vmul.f32 %v804_v43, %v354_v22  ;;  %v359_v30 = vld [vmem:[#allocation2 + $0x30] sm:$0xff]  ;;  %322 = vst.msk [vmem:[#allocation2 + $0x28] sm:$0xff] %vm26_vm0, %v305_v23  ;;  %v310_v31 = vadd.f32 %v616_v24, %v85_v21  ;;  %v269_v32 = vpop.f32.mrf.mxu1 }
 0x13c   :  { %v521_v34 = vsel %vm488_vm2, %v472_v19, %v505_v26  ;;  %vm491_vm3 = vcmp.ge.f32.partialorder %v475_v27, 0.0  ;;  %v508_v35 = vmul.f32 %v827_v8, %v475_v27  ;;  %v455_v36 = vmul.f32 %v810_v52, %v359_v30  ;;  %v437_v26 = vpop.permute.xlu1 %436 }
 0x13d   :  { %537 = vst.msk [vmem:[%s949_s5] sm:$0xff] %vm26_vm0, %v521_v34  ;;  %v473_v38 = vadd.f32 %v821_v3, %v450_v29  ;;  %v357_v39 = vld [vmem:[#allocation2 + $0x20] sm:$0xff]  ;;  %327 = vst.msk [vmem:[#allocation2 + $0x50] sm:$0xff] %vm26_vm0, %v310_v31  ;;  %v308_v40 = vadd.f32 %v269_v32, %v83_v28  ;;  %v617_v41 = vpop.f32.mrf.mxu1 }
 0x13e   :  { %v524_v42 = vsel %vm491_vm3, %v475_v27, %v508_v35  ;;  %v478_v43 = vadd.f32 %v821_v3, %v455_v36  ;;  %v453_v44 = vmul.f32 %v806_v46, %v357_v39  ;;  %v311_v45 = vadd.f32 %v617_v41, %v86_v33 }
 0x13f   :  { %540 = vst.msk [vmem:[%s949_s5 + $0x18] sm:$0xff] %vm26_vm0, %v524_v42  ;;  %vm489_vm4 = vcmp.ge.f32.partialorder %v473_v38, 0.0  ;;  %v506_v49 = vmul.f32 %v827_v8, %v473_v38  ;;  %v360_v50 = vld [vmem:[#allocation2 + $0x38] sm:$0xff]  ;;  %325 = vst.msk [vmem:[#allocation2 + $0x40] sm:$0xff] %vm26_vm0, %v308_v40  ;;  %v272_v51 = vpop.f32.mrf.mxu1 }
 0x140   :  { %vm494_vm5 = vcmp.ge.f32.partialorder %v478_v43, 0.0  ;;  %v511_v52 = vmul.f32 %v827_v8, %v478_v43  ;;  %v476_v53 = vadd.f32 %v821_v3, %v453_v44  ;;  %v456_v46 = vmul.f32 %v815_v62, %v360_v50  ;;  %328 = vst.msk [vmem:[#allocation2 + $0x58] sm:$0xff] %vm26_vm0, %v311_v45 }
 0x141   :  { %v522_v56 = vsel %vm489_vm4, %v473_v38, %v506_v49  ;;  %v309_v57 = vadd.f32 %v272_v51, %v84_v48  ;;  %v620_v58 = vpop.f32.mrf.mxu1 }
 0x142   :  { %538 = vst.msk [vmem:[%s949_s5 + $0x8] sm:$0xff] %vm26_vm0, %v522_v56  ;;  %v527_v60 = vsel %vm494_vm5, %v478_v43, %v511_v52  ;;  %vm492_vm6 = vcmp.ge.f32.partialorder %v476_v53, 0.0  ;;  %v509_v61 = vmul.f32 %v827_v8, %v476_v53  ;;  %v479_v63 = vadd.f32 %v821_v3, %v456_v46  ;;  %v358_v62 = vld [vmem:[#allocation2 + $0x28] sm:$0xff]  ;;  %v447_v43 = vpop.permute.xlu1 %446 }
 0x143   :  { %543 = vst.msk [vmem:[%s949_s5 + $0x30] sm:$0xff] %vm26_vm0, %v527_v60  ;;  %v454_v1 = vmul.f32 %v808_v47, %v358_v62  ;;  %326 = vst.msk [vmem:[#allocation2 + $0x48] sm:$0xff] %vm26_vm0, %v309_v57  ;;  %v314_v2 = vadd.f32 %v620_v58, %v89_v54  ;;  %v285_v4 = vpop.f32.mrf.mxu1 }
 0x144   :  { %v525_v6 = vsel %vm492_vm6, %v476_v53, %v509_v61  ;;  %vm495_vm7 = vcmp.ge.f32.partialorder %v479_v63, 0.0  ;;  %v512_v7 = vmul.f32 %v827_v8, %v479_v63  ;;  %v363_v9 = vld [vmem:[#allocation2 + $0x50] sm:$0xff]  ;;  %v312_v10 = vadd.f32 %v285_v4, %v87_v59 }
 0x145   :  { %541 = vst.msk [vmem:[%s949_s5 + $0x20] sm:$0xff] %vm26_vm0, %v525_v6  ;;  %v477_v11 = vadd.f32 %v821_v3, %v454_v1  ;;  %v459_v12 = vmul.f32 %v422_v37, %v363_v9  ;;  %331 = vst.msk [vmem:[#allocation2 + $0x70] sm:$0xff] %vm26_vm0, %v314_v2  ;;  %v621_v47 = vpop.f32.mrf.mxu1  ;;  %v442_v37 = vpop.permute.xlu0 %441 }
 0x146   :  { %v528_v14 = vsel %vm495_vm7, %v479_v63, %v512_v7  ;;  %v361_v16 = vld [vmem:[#allocation2 + $0x40] sm:$0xff]  ;;  %329 = vst.msk [vmem:[#allocation2 + $0x60] sm:$0xff] %vm26_vm0, %v312_v10  ;;  %v315_v17 = vadd.f32 %v621_v47, %v90_v5 }
 0x147   :  { %544 = vst.msk [vmem:[%s949_s5 + $0x38] sm:$0xff] %vm26_vm0, %v528_v14  ;;  %vm493_vm8 = vcmp.ge.f32.partialorder %v477_v11, 0.0  ;;  %v510_v19 = vmul.f32 %v827_v8, %v477_v11  ;;  %v482_v20 = vadd.f32 %v821_v3, %v459_v12  ;;  %v364_v21 = vld [vmem:[#allocation2 + $0x58] sm:$0xff]  ;;  %v457_v22 = vmul.f32 %v412_v55, %v361_v16  ;;  %v288_v23 = vpop.f32.mrf.mxu1 }
 0x148   :  { %v460_v24 = vmul.f32 %v427_v0, %v364_v21  ;;  %332 = vst.msk [vmem:[#allocation2 + $0x78] sm:$0xff] %vm26_vm0, %v315_v17  ;;  %v313_v25 = vadd.f32 %v288_v23, %v88_v13 }
 0x149   :  { %v526_v27 = vsel %vm493_vm8, %v477_v11, %v510_v19  ;;  %vm498_vm9 = vcmp.ge.f32.partialorder %v482_v20, 0.0  ;;  %v515_v28 = vmul.f32 %v827_v8, %v482_v20  ;;  %v480_v29 = vadd.f32 %v821_v3, %v457_v22 }
 0x14a   :  { %542 = vst.msk [vmem:[%s949_s5 + $0x28] sm:$0xff] %vm26_vm0, %v526_v27  ;;  %v483_v30 = vadd.f32 %v821_v3, %v460_v24  ;;  %v362_v31 = vld [vmem:[#allocation2 + $0x48] sm:$0xff]  ;;  %330 = vst.msk [vmem:[#allocation2 + $0x68] sm:$0xff] %vm26_vm0, %v313_v25 }
 0x14b   :  { %v531_v32 = vsel %vm498_vm9, %v482_v20, %v515_v28  ;;  %v458_v33 = vmul.f32 %v831_v15, %v362_v31  ;;  %vm496_vm10 = vcmp.ge.f32.partialorder %v480_v29, 0.0  ;;  %v513_v34 = vmul.f32 %v827_v8, %v480_v29 }
 0x14c   :  { %547 = vst.msk [vmem:[%s949_s5 + $0x50] sm:$0xff] %vm26_vm0, %v531_v32  ;;  %vm499_vm11 = vcmp.ge.f32.partialorder %v483_v30, 0.0  ;;  %v516_v35 = vmul.f32 %v827_v8, %v483_v30  ;;  %v367_v36 = vld [vmem:[#allocation2 + $0x70] sm:$0xff] }
 0x14d   :  { %v481_v38 = vadd.f32 %v821_v3, %v458_v33  ;;  %v529_v39 = vsel %vm496_vm10, %v480_v29, %v513_v34  ;;  %v365_v40 = vld [vmem:[#allocation2 + $0x60] sm:$0xff]  ;;  %v463_v41 = vmul.f32 %v442_v37, %v367_v36 }
 0x14e   :  { %v532_v42 = vsel %vm499_vm11, %v483_v30, %v516_v35  ;;  %545 = vst.msk [vmem:[%s949_s5 + $0x40] sm:$0xff] %vm26_vm0, %v529_v39  ;;  %v461_v15 = vmul.f32 %v432_v18, %v365_v40 }
 0x14f   :  { %548 = vst.msk [vmem:[%s949_s5 + $0x58] sm:$0xff] %vm26_vm0, %v532_v42  ;;  %vm497_vm12 = vcmp.ge.f32.partialorder %v481_v38, 0.0  ;;  %v514_v44 = vmul.f32 %v827_v8, %v481_v38  ;;  %v368_v45 = vld [vmem:[#allocation2 + $0x78] sm:$0xff]  ;;  %v486_v48 = vadd.f32 %v821_v3, %v463_v41 }
 0x150   :  { %v464_v49 = vmul.f32 %v447_v43, %v368_v45  ;;  %v484_v50 = vadd.f32 %v821_v3, %v461_v15 }
 0x151   :  { %v530_v51 = vsel %vm497_vm12, %v481_v38, %v514_v44  ;;  %v366_v52 = vld [vmem:[#allocation2 + $0x68] sm:$0xff]  ;;  %vm502_vm13 = vcmp.ge.f32.partialorder %v486_v48, 0.0  ;;  %v519_v53 = vmul.f32 %v827_v8, %v486_v48 }
 0x152   :  { %546 = vst.msk [vmem:[%s949_s5 + $0x48] sm:$0xff] %vm26_vm0, %v530_v51  ;;  %v487_v46 = vadd.f32 %v821_v3, %v464_v49  ;;  %vm500_vm14 = vcmp.ge.f32.partialorder %v484_v50, 0.0  ;;  %v517_v54 = vmul.f32 %v827_v8, %v484_v50  ;;  %v462_v55 = vmul.f32 %v437_v26, %v366_v52 }
 0x153   :  { %v535_v56 = vsel %vm502_vm13, %v486_v48, %v519_v53 }
 0x154   :  { %vm503_vm15 = vcmp.ge.f32.partialorder %v487_v46, 0.0  ;;  %v520_v57 = vmul.f32 %v827_v8, %v487_v46  ;;  %v533_v58 = vsel %vm500_vm14, %v484_v50, %v517_v54  ;;  %v485_v59 = vadd.f32 %v821_v3, %v462_v55  ;;  %551 = vst.msk [vmem:[%s949_s5 + $0x70] sm:$0xff] %vm26_vm0, %v535_v56 }
 0x155   :  { %549 = vst.msk [vmem:[%s949_s5 + $0x60] sm:$0xff] %vm26_vm0, %v533_v58 }
 0x156   :  { %v536_v60 = vsel %vm503_vm15, %v487_v46, %v520_v57  ;;  %vm501_vm1 = vcmp.ge.f32.partialorder %v485_v59, 0.0  ;;  %v518_v61 = vmul.f32 %v827_v8, %v485_v59 }
 0x157   :  { %552 = vst.msk [vmem:[%s949_s5 + $0x78] sm:$0xff] %vm26_vm0, %v536_v60 }
 0x158   :  { %v534_v3 = vsel %vm501_vm1, %v485_v59, %v518_v61 }
 0x159   :  { %550 = vst.msk [vmem:[%s949_s5 + $0x68] sm:$0xff] %vm26_vm0, %v534_v3 }

</bundles_post_ra>
